<compile_context>
chip_gen: v6e
topology: v6e:2x2x1
jax: 0.10.0
libtpu: 0.0.40
codegen_flags: <defaults>
</compile_context>

<pallas_src>
import functools

import jax
import jax.numpy as jnp
from jax import lax
from jax.experimental import pallas as pl
from jax.experimental.pallas import tpu as pltpu

LEAKY_SLOPE = 0.01  # PyTorch leaky_relu default


def _leaky_relu(x):
    return jnp.where(x > 0, x, LEAKY_SLOPE * x)


def _round16(n):
    return ((n + 15) // 16) * 16


def _group_layout(n_fine, k_mid, k_lrg):
    """Node-row layout [fine | mid | large], each group padded to 16 sublanes
    (16-row alignment keeps bf16 casts of group slices repack-free)."""
    n_mid, n_lrg = n_fine // k_mid, n_fine // k_lrg
    nf_p, nm_p, nl_p = _round16(n_fine), _round16(n_mid), _round16(n_lrg)
    groups = ((0, nf_p), (nf_p, nm_p), (nf_p + nm_p, nl_p))
    return groups, nf_p + nm_p + nl_p


# ---------------------------------------------------------------------------
# Single fused kernel.
#   grid=(n_layers,)
#   layer 0      : encoder (per-group ResidualMLP) -> x_sc, h_sc = 0
#   every layer  : one multi-res A3TGCN step on the VMEM-carried state
#   last layer   : coarse decoders + un-pool + readout + 0.3*x residual -> out
# ---------------------------------------------------------------------------
def _fused_kernel(xin_ref, ew1s_ref, eb1_ref, ew2_ref, eb2s_ref,
                  a_ref, wxh_ref, b_ref, alpha_ref,
                  dw1_ref, db1_ref, dw2_ref, db2_ref, u_ref,
                  rw1s_ref, rb1_ref, rw2_ref, rb2s_ref, xlast_ref,
                  o_ref, x_sc, h_sc,
                  *, groups, whid, hidden, window, n_lrg):
    layer = pl.program_id(0)
    n_layers = pl.num_programs(0)

    # ----- layer 0: fused 3-resolution encoder + zero hidden state ----------
    @pl.when(layer == 0)
    def _encode():
        x = xin_ref[...]
        for g, (r0, rn) in enumerate(groups):
            xg = x[r0:r0 + rn, :].astype(jnp.bfloat16)
            # [W1 | Wskip] in one matmul, time-block-diagonal weights.
            hs = jnp.dot(xg, ew1s_ref[g], preferred_element_type=jnp.float32)
            h1 = _leaky_relu(hs[:, :whid] + eb1_ref[g]).astype(jnp.bfloat16)
            y = jnp.dot(h1, ew2_ref[g], preferred_element_type=jnp.float32)
            x_sc[r0:r0 + rn, :] = y + hs[:, whid:] + eb2s_ref[g]
        h_sc[...] = jnp.zeros_like(h_sc)
        o_ref[...] = jnp.zeros_like(o_ref)

    # ----- every layer: one multi-resolution A3TGCN step ---------------------
    x = x_sc[...]
    h = h_sc[...]
    ax = jnp.dot(a_ref[...], x.astype(jnp.bfloat16),
                 preferred_element_type=jnp.float32)
    for g, (r0, rn) in enumerate(groups):
        # merged Wx/Wh: one (rn, 2*W*H) @ (2*W*H, W*H) matmul per group.
        zin = jnp.concatenate([ax[r0:r0 + rn], h[r0:r0 + rn]],
                              axis=-1).astype(jnp.bfloat16)
        z = jnp.tanh(
            jnp.dot(zin, wxh_ref[0, g], preferred_element_type=jnp.float32)
            + b_ref[0, g])
        hg = z * alpha_ref[0, g]
        if g == len(groups) - 1 and n_lrg < rn:
            # keep padded rows of the large-res group at exactly zero so the
            # carried residual stream never accumulates tanh(b) garbage.
            row = lax.broadcasted_iota(jnp.int32, (rn, whid), 0)
            hg = jnp.where(row < n_lrg, hg, 0.0)
        h_sc[r0:r0 + rn, :] = hg
        x_sc[r0:r0 + rn, :] = x[r0:r0 + rn, :] + hg

    # ----- last layer: merged coarse decoders + un-pool + readout ------------
    @pl.when(layer == n_layers - 1)
    def _head():
        (f0, fn), (m0, mn), (_, ln) = groups
        last = (window - 1) * hidden
        xf = x_sc[...]
        enc_last = xf[f0:f0 + fn, last:last + hidden]          # (n_fine, H)
        coarse = xf[m0:m0 + mn + ln, last:last + hidden]       # (mn+ln, H)

        nr = mn + ln
        row = lax.broadcasted_iota(jnp.int32, (nr, hidden), 0)
        is_mid = (row < mn).astype(jnp.float32)
        is_lrg = 1.0 - is_mid

        def lane_dup(v):   # per-row-block weight selection via masked lane dup
            return jnp.concatenate([v * is_mid, v * is_lrg], axis=-1)

        # both coarse decoders in one pair of matmuls (row-block weights).
        hs = jnp.dot(lane_dup(coarse).astype(jnp.bfloat16), dw1_ref[...],
                     preferred_element_type=jnp.float32)       # (nr, 2H)
        h1 = _leaky_relu(hs[:, :hidden] + db1_ref[...])
        y = jnp.dot(lane_dup(h1).astype(jnp.bfloat16), dw2_ref[...],
                    preferred_element_type=jnp.float32)        # (nr, H)
        dec = y + hs[:, hidden:] + db2_ref[...]                # (nr, H)

        # single un-pool matmul -> lanes [mid_fine | lrg_fine]
        up = jnp.dot(u_ref[...], lane_dup(dec).astype(jnp.bfloat16),
                     preferred_element_type=jnp.float32)       # (n_fine, 2H)
        xcat = jnp.concatenate([enc_last, up], axis=-1)        # (n_fine, 3H)

        # readout ResidualMLP ([W1 | Wskip] merged) + 0.3 * x[:, -1] residual.
        rs = jnp.dot(xcat.astype(jnp.bfloat16), rw1s_ref[...],
                     preferred_element_type=jnp.float32)
        rh = _leaky_relu(rs[:, :hidden] + rb1_ref[...]).astype(jnp.bfloat16)
        ry = jnp.dot(rh, rw2_ref[...], preferred_element_type=jnp.float32)
        out = ry + rs[:, hidden:] + rb2s_ref[...]
        o_ref[...] = (out + 0.3 * xlast_ref[...]).astype(o_ref.dtype)


# ---------------------------------------------------------------------------
# Parameter init (deterministic synthetic weights, "natural" layout)
# ---------------------------------------------------------------------------
def _mlp_params(key, fin, fh, fout):
    k = jax.random.split(key, 6)
    return (
        0.05 * jax.random.normal(k[0], (fin, fh), jnp.float32),
        0.05 * jax.random.normal(k[1], (1, fh), jnp.float32),
        0.05 * jax.random.normal(k[2], (fh, fout), jnp.float32),
        0.05 * jax.random.normal(k[3], (1, fout), jnp.float32),
        0.05 * jax.random.normal(k[4], (fin, fout), jnp.float32),
        0.05 * jax.random.normal(k[5], (1, fout), jnp.float32),
    )


def _a3tgcn_params(key, hidden, window):
    k = jax.random.split(key, 4)
    return (
        0.05 * jax.random.normal(k[0], (hidden, hidden), jnp.float32),
        0.05 * jax.random.normal(k[1], (hidden, hidden), jnp.float32),
        0.05 * jax.random.normal(k[2], (1, hidden), jnp.float32),
        0.05 * jax.random.normal(k[3], (window,), jnp.float32),
    )


def init_multires_params(key, *, input_size, hidden, out_features, window,
                         n_layers):
    keys = jax.random.split(key, 7 + 3 * n_layers)
    p = {
        "encode": _mlp_params(keys[0], input_size, hidden, hidden),
        "enc_mid": _mlp_params(keys[1], input_size, hidden, hidden),
        "enc_lrg": _mlp_params(keys[2], input_size, hidden, hidden),
        "dec_mid": _mlp_params(keys[3], hidden, hidden, hidden),
        "dec_lrg": _mlp_params(keys[4], hidden, hidden, hidden),
        "readout": _mlp_params(keys[5], 3 * hidden, hidden, out_features),
        "hi": [], "md": [], "lo": [],
    }
    for l in range(n_layers):
        p["hi"].append(_a3tgcn_params(keys[6 + 3 * l + 0], hidden, window))
        p["md"].append(_a3tgcn_params(keys[6 + 3 * l + 1], hidden, window))
        p["lo"].append(_a3tgcn_params(keys[6 + 3 * l + 2], hidden, window))
    return p


# ---------------------------------------------------------------------------
# Graph / pooling glue (plain JAX)
# ---------------------------------------------------------------------------
def build_norm_adj_from_edges(edge_index, n):
    a = jnp.zeros((n, n), jnp.float32)
    a = a.at[edge_index[0], edge_index[1]].set(1.0)
    a = a.at[edge_index[1], edge_index[0]].set(1.0)
    a = jnp.minimum(a + jnp.eye(n, dtype=jnp.float32), 1.0)
    dinv = 1.0 / jnp.sqrt(a.sum(axis=1))
    return a * dinv[:, None] * dinv[None, :]


def ring_norm_adj(n):
    idx = jnp.arange(n)
    a = jnp.zeros((n, n), jnp.float32)
    a = a.at[idx, (idx + 1) % n].set(1.0)
    a = a.at[idx, (idx - 1) % n].set(1.0)
    a = jnp.minimum(a + jnp.eye(n, dtype=jnp.float32), 1.0)
    dinv = 1.0 / jnp.sqrt(a.sum(axis=1))
    return a * dinv[:, None] * dinv[None, :]


def mean_pool_nodes(x_nwf, k):
    n, w, f = x_nwf.shape
    return x_nwf.reshape(n // k, k, w, f).mean(axis=1)


def _time_blockdiag(w, window):
    """(fin, fout) -> (W*fin, W*fout) block-diag of W copies (per-timestep)."""
    fin, fout = w.shape
    eye = jnp.eye(window, dtype=w.dtype)
    return (eye[:, None, :, None] * w[None, :, None, :]).reshape(
        window * fin, window * fout)


# ---------------------------------------------------------------------------
# Build fused / lane-dense kernel operands from the natural params (one-time).
# ---------------------------------------------------------------------------
def build_fused_operands(params, edge_index, *, n_fine, k_mid, k_lrg, hidden,
                         window, n_layers):
    n_mid, n_lrg = n_fine // k_mid, n_fine // k_lrg
    groups, n_pad = _group_layout(n_fine, k_mid, k_lrg)
    (f0, _), (m0, mn), (l0, ln) = groups

    # block-diagonal normalized adjacency over the three resolutions.
    a = jnp.zeros((n_pad, n_pad), jnp.float32)
    a = a.at[f0:f0 + n_fine, f0:f0 + n_fine].set(
        build_norm_adj_from_edges(edge_index, n_fine))
    a = a.at[m0:m0 + n_mid, m0:m0 + n_mid].set(ring_norm_adj(n_mid))
    a = a.at[l0:l0 + n_lrg, l0:l0 + n_lrg].set(ring_norm_adj(n_lrg))

    def enc_pack(p):
        w1, b1, w2, b2, ws, bs = p
        w1s = jnp.concatenate([_time_blockdiag(w1, window),
                               _time_blockdiag(ws, window)], axis=1)
        return (w1s.astype(jnp.bfloat16),
                jnp.tile(b1, (1, window)),
                _time_blockdiag(w2, window).astype(jnp.bfloat16),
                jnp.tile(b2 + bs, (1, window)))

    enc = [enc_pack(params[k]) for k in ("encode", "enc_mid", "enc_lrg")]
    enc_ops = tuple(jnp.stack([e[i] for e in enc]) for i in range(4))

    # per-layer RNN weights: merged [Wx ; Wh] time-block-diag, tiled bias,
    # softmax temporal attention repeated over hidden lanes.
    wxh, brow, arow = [], [], []
    for l in range(n_layers):
        layer_p = [params["hi"][l], params["md"][l], params["lo"][l]]
        wxh.append(jnp.stack([jnp.concatenate(
            [_time_blockdiag(p[0], window), _time_blockdiag(p[1], window)],
            axis=0) for p in layer_p]))
        brow.append(jnp.stack([jnp.tile(p[2], (1, window)) for p in layer_p]))
        arow.append(jnp.stack(
            [jnp.repeat(jax.nn.softmax(p[3]), hidden)[None, :]
             for p in layer_p]))
    rnn_ops = (jnp.stack(wxh).astype(jnp.bfloat16),
               jnp.stack(brow), jnp.stack(arow))

    # merged mid+large coarse decoders: row-block stacked weights + per-row biases.
    def dec_pack(pm, pg):
        w1m, b1m, w2m, b2m, wsm, bsm = pm
        w1l, b1l, w2l, b2l, wsl, bsl = pg
        dw1 = jnp.concatenate(
            [jnp.concatenate([w1m, wsm], axis=1),
             jnp.concatenate([w1l, wsl], axis=1)], axis=0)      # (2H, 2H)
        dw2 = jnp.concatenate([w2m, w2l], axis=0)               # (2H, H)
        db1 = jnp.concatenate([jnp.tile(b1m, (mn, 1)),
                               jnp.tile(b1l, (ln, 1))], axis=0)
        db2 = jnp.concatenate([jnp.tile(b2m + bsm, (mn, 1)),
                               jnp.tile(b2l + bsl, (ln, 1))], axis=0)
        return (dw1.astype(jnp.bfloat16), db1,
                dw2.astype(jnp.bfloat16), db2)

    dec_ops = dec_pack(params["dec_mid"], params["dec_lrg"])

    # single un-pool selector: picks mid rows for lanes [0:H], lrg rows for [H:2H].
    rows = jnp.arange(n_fine)
    cols = jnp.arange(mn + ln)
    u = ((cols[None, :] == rows[:, None] // k_mid)
         | (cols[None, :] == mn + rows[:, None] // k_lrg)).astype(jnp.bfloat16)

    def ro_pack(p):
        w1, b1, w2, b2, ws, bs = p
        return (jnp.concatenate([w1, ws], axis=1).astype(jnp.bfloat16),
                b1, w2.astype(jnp.bfloat16), b2 + bs)

    return dict(a=a.astype(jnp.bfloat16), enc=enc_ops, rnn=rnn_ops,
                dec=dec_ops, u=u, readout=ro_pack(params["readout"]))


# ---------------------------------------------------------------------------
# Full MultiResGCN forward: ONE pallas_call.
# ---------------------------------------------------------------------------
def multi_res_gcn_forward(x, fused, *, hidden, window, n_layers, k_mid, k_lrg):
    n_fine, _, f_in = x.shape
    n_mid, n_lrg = n_fine // k_mid, n_fine // k_lrg
    groups, n_pad = _group_layout(n_fine, k_mid, k_lrg)
    (f0, _), (m0, _), (l0, _) = groups
    wh = window * hidden
    wf = window * f_in
    fout = fused["readout"][3].shape[-1]

    # pooling + (node, time*feature) packing: cheap plain-JAX glue.
    xin = jnp.zeros((n_pad, wf), jnp.float32)
    xin = xin.at[f0:f0 + n_fine].set(x.reshape(n_fine, wf))
    xin = xin.at[m0:m0 + n_mid].set(
        mean_pool_nodes(x, k_mid).reshape(n_mid, wf))
    xin = xin.at[l0:l0 + n_lrg].set(
        mean_pool_nodes(x, k_lrg).reshape(n_lrg, wf))

    ew1s, eb1, ew2, eb2s = fused["enc"]
    wxh, brow, arow = fused["rnn"]
    dw1, db1, dw2, db2 = fused["dec"]
    rw1s, rb1, rw2, rb2s = fused["readout"]
    xlast = x[:, -1, :]

    def fixed(ndim):
        return lambda l, _nd=ndim: (0,) * _nd

    in_specs = [
        pl.BlockSpec(xin.shape, fixed(2)),
        pl.BlockSpec(ew1s.shape, fixed(3)),
        pl.BlockSpec(eb1.shape, fixed(3)),
        pl.BlockSpec(ew2.shape, fixed(3)),
        pl.BlockSpec(eb2s.shape, fixed(3)),
        pl.BlockSpec(fused["a"].shape, fixed(2)),
        pl.BlockSpec((1,) + wxh.shape[1:], lambda l: (l, 0, 0, 0)),
        pl.BlockSpec((1,) + brow.shape[1:], lambda l: (l, 0, 0, 0)),
        pl.BlockSpec((1,) + arow.shape[1:], lambda l: (l, 0, 0, 0)),
        pl.BlockSpec(dw1.shape, fixed(2)),
        pl.BlockSpec(db1.shape, fixed(2)),
        pl.BlockSpec(dw2.shape, fixed(2)),
        pl.BlockSpec(db2.shape, fixed(2)),
        pl.BlockSpec(fused["u"].shape, fixed(2)),
        pl.BlockSpec(rw1s.shape, fixed(2)),
        pl.BlockSpec(rb1.shape, fixed(2)),
        pl.BlockSpec(rw2.shape, fixed(2)),
        pl.BlockSpec(rb2s.shape, fixed(2)),
        pl.BlockSpec(xlast.shape, fixed(2)),
    ]

    out = pl.pallas_call(
        functools.partial(_fused_kernel, groups=groups, whid=wh,
                          hidden=hidden, window=window, n_lrg=n_lrg),
        out_shape=jax.ShapeDtypeStruct((n_fine, fout), jnp.float32),
        grid=(n_layers,),
        in_specs=in_specs,
        out_specs=pl.BlockSpec((n_fine, fout), fixed(2)),
        scratch_shapes=[pltpu.VMEM((n_pad, wh), jnp.float32),   # carried x
                        pltpu.VMEM((n_pad, wh), jnp.float32)],  # carried h
        compiler_params=pltpu.CompilerParams(
            # layer axis carries x/h state -> must stay sequential.
            dimension_semantics=("arbitrary",)),
    )(xin, ew1s, eb1, ew2, eb2s, fused["a"], wxh, brow, arow,
      dw1, db1, dw2, db2, fused["u"], rw1s, rb1, rw2, rb2s, xlast)

    return out[:, None, :]


# ---------------------------------------------------------------------------
# Pure-JAX f32 reference (same surrogate semantics) for validation
# ---------------------------------------------------------------------------
def _reference_forward(x, edge_index, params, *, hidden, n_layers, k_mid,
                       k_lrg):
    n_fine, window, f_in = x.shape
    n_mid, n_lrg = n_fine // k_mid, n_fine // k_lrg
    a_fine = build_norm_adj_from_edges(edge_index, n_fine)
    a_mid, a_lrg = ring_norm_adj(n_mid), ring_norm_adj(n_lrg)

    def mlp(x2d, p):
        w1, b1, w2, b2, ws, bs = p
        return _leaky_relu(x2d @ w1 + b1) @ w2 + b2 + x2d @ ws + bs

    def encode(xs, p):  # (n, W, F) -> (W, n, H)
        n = xs.shape[0]
        y = mlp(xs.reshape(n * window, f_in), p)
        return y.reshape(n, window, hidden).transpose(1, 0, 2)

    enc = encode(x, params["encode"])
    mid = encode(mean_pool_nodes(x, k_mid), params["enc_mid"])
    lrg = encode(mean_pool_nodes(x, k_lrg), params["enc_lrg"])

    def a3tgcn(xw, hw, a, p):
        wx, wh, b, att = p
        alpha = jax.nn.softmax(att)
        return jnp.stack([alpha[t] * jnp.tanh(a @ xw[t] @ wx + hw[t] @ wh + b)
                          for t in range(window)])

    h_f, h_m, h_l = (jnp.zeros_like(enc), jnp.zeros_like(mid),
                     jnp.zeros_like(lrg))
    for l in range(n_layers):
        rf, rm, rl = enc, mid, lrg
        h_f = a3tgcn(enc, h_f, a_fine, params["hi"][l])
        h_m = a3tgcn(mid, h_m, a_mid, params["md"][l])
        h_l = a3tgcn(lrg, h_l, a_lrg, params["lo"][l])
        enc, mid, lrg = h_f + rf, h_m + rm, h_l + rl

    mid_fine = jnp.repeat(mlp(mid[-1], params["dec_mid"]), k_mid, axis=0)
    lrg_fine = jnp.repeat(mlp(lrg[-1], params["dec_lrg"]), k_lrg, axis=0)
    xcat = jnp.concatenate([enc[-1], mid_fine, lrg_fine], axis=-1)
    out = mlp(xcat, params["readout"])[:, None, :]
    return out + 0.3 * x[:, -1:, :]


# ---------------------------------------------------------------------------
# Driver
# ---------------------------------------------------------------------------
def _grid_edge_index(h, w):
    src, dst = [], []
    for i in range(h):
        for j in range(w):
            u = i * w + j
            if j + 1 < w:
                v = i * w + (j + 1)
                src += [u, v]; dst += [v, u]
            if i + 1 < h:
                v = (i + 1) * w + j
                src += [u, v]; dst += [v, u]
    return jnp.array([src, dst], dtype=jnp.int32)


if __name__ == "__main__":
    GRID_H, GRID_W = 8, 8
    N_FINE = GRID_H * GRID_W      # n_nodes
    WINDOW = 4                    # periods (window*hidden = 128 lanes)
    INPUT_SIZE = 8                # input_size == out_features (residual add)
    HIDDEN = 32
    OUT_FEATURES = 8
    N_LAYERS = 2
    K_MID, K_LRG = 4, 16          # fine->medium, fine->large coarsening

    key = jax.random.PRNGKey(0)
    kx, kp = jax.random.split(key)
    x = jax.random.normal(kx, (N_FINE, WINDOW, INPUT_SIZE), jnp.float32)
    edge_index = _grid_edge_index(GRID_H, GRID_W)

    params = init_multires_params(
        kp, input_size=INPUT_SIZE, hidden=HIDDEN, out_features=OUT_FEATURES,
        window=WINDOW, n_layers=N_LAYERS)
    fused = build_fused_operands(
        params, edge_index, n_fine=N_FINE, k_mid=K_MID, k_lrg=K_LRG,
        hidden=HIDDEN, window=WINDOW, n_layers=N_LAYERS)

    fwd = jax.jit(functools.partial(
        multi_res_gcn_forward, hidden=HIDDEN, window=WINDOW,
        n_layers=N_LAYERS, k_mid=K_MID, k_lrg=K_LRG))

    out = jax.block_until_ready(fwd(x, fused))
    assert out.shape == (N_FINE, 1, OUT_FEATURES), out.shape
    assert bool(jnp.all(jnp.isfinite(out)))

    # validate against the pure-JAX f32 reference (bf16 matmuls -> loose tol).
    ref = _reference_forward(x, edge_index, params, hidden=HIDDEN,
                             n_layers=N_LAYERS, k_mid=K_MID, k_lrg=K_LRG)
    err = float(jnp.max(jnp.abs(out - ref)))
    assert err < 5e-2, f"max abs err vs reference: {err}"

    print("KERNEL_OK")
</pallas_src>

<mosaic_0001>
module attributes {stable_mosaic.version = 11 : i64} {
  func.func @_fused_kernel(%arg0: i32, %arg1: memref<96x32xf32, #tpu.memory_space<vmem>>, %arg2: memref<3x32x256xbf16, #tpu.memory_space<vmem>>, %arg3: memref<3x1x128xf32, #tpu.memory_space<vmem>>, %arg4: memref<3x128x128xbf16, #tpu.memory_space<vmem>>, %arg5: memref<3x1x128xf32, #tpu.memory_space<vmem>>, %arg6: memref<96x96xbf16, #tpu.memory_space<vmem>>, %arg7: memref<1x3x256x128xbf16, #tpu.memory_space<vmem>>, %arg8: memref<1x3x1x128xf32, #tpu.memory_space<vmem>>, %arg9: memref<1x3x1x128xf32, #tpu.memory_space<vmem>>, %arg10: memref<64x64xbf16, #tpu.memory_space<vmem>>, %arg11: memref<32x32xf32, #tpu.memory_space<vmem>>, %arg12: memref<64x32xbf16, #tpu.memory_space<vmem>>, %arg13: memref<32x32xf32, #tpu.memory_space<vmem>>, %arg14: memref<64x32xbf16, #tpu.memory_space<vmem>>, %arg15: memref<96x40xbf16, #tpu.memory_space<vmem>>, %arg16: memref<1x32xf32, #tpu.memory_space<vmem>>, %arg17: memref<32x8xbf16, #tpu.memory_space<vmem>>, %arg18: memref<1x8xf32, #tpu.memory_space<vmem>>, %arg19: memref<64x8xf32, #tpu.memory_space<vmem>>, %arg20: memref<64x8xf32, #tpu.memory_space<vmem>>, %arg21: memref<96x128xf32, #tpu.memory_space<vmem>>, %arg22: memref<96x128xf32, #tpu.memory_space<vmem>>) attributes {dimension_semantics = [#tpu.dimension_semantics<arbitrary>], iteration_bounds = array<i64: 2>, scalar_prefetch = 0 : i64, scratch_operands = 2 : i64, tpu.core_type = #tpu.core_type<tc>, window_params = [{pipeline_mode = #tpu.pipeline_mode<synchronous>, transform_indices = @transform_0, window_bounds = array<i64: 96, 32>}, {pipeline_mode = #tpu.pipeline_mode<synchronous>, transform_indices = @transform_1, window_bounds = array<i64: 3, 32, 256>}, {pipeline_mode = #tpu.pipeline_mode<synchronous>, transform_indices = @transform_2, window_bounds = array<i64: 3, 1, 128>}, {pipeline_mode = #tpu.pipeline_mode<synchronous>, transform_indices = @transform_3, window_bounds = array<i64: 3, 128, 128>}, {pipeline_mode = #tpu.pipeline_mode<synchronous>, transform_indices = @transform_4, window_bounds = array<i64: 3, 1, 128>}, {pipeline_mode = #tpu.pipeline_mode<synchronous>, transform_indices = @transform_5, window_bounds = array<i64: 96, 96>}, {transform_indices = @transform_6, window_bounds = array<i64: 1, 3, 256, 128>}, {transform_indices = @transform_7, window_bounds = array<i64: 1, 3, 1, 128>}, {transform_indices = @transform_8, window_bounds = array<i64: 1, 3, 1, 128>}, {pipeline_mode = #tpu.pipeline_mode<synchronous>, transform_indices = @transform_9, window_bounds = array<i64: 64, 64>}, {pipeline_mode = #tpu.pipeline_mode<synchronous>, transform_indices = @transform_10, window_bounds = array<i64: 32, 32>}, {pipeline_mode = #tpu.pipeline_mode<synchronous>, transform_indices = @transform_11, window_bounds = array<i64: 64, 32>}, {pipeline_mode = #tpu.pipeline_mode<synchronous>, transform_indices = @transform_12, window_bounds = array<i64: 32, 32>}, {pipeline_mode = #tpu.pipeline_mode<synchronous>, transform_indices = @transform_13, window_bounds = array<i64: 64, 32>}, {pipeline_mode = #tpu.pipeline_mode<synchronous>, transform_indices = @transform_14, window_bounds = array<i64: 96, 40>}, {pipeline_mode = #tpu.pipeline_mode<synchronous>, transform_indices = @transform_15, window_bounds = array<i64: 1, 32>}, {pipeline_mode = #tpu.pipeline_mode<synchronous>, transform_indices = @transform_16, window_bounds = array<i64: 32, 8>}, {pipeline_mode = #tpu.pipeline_mode<synchronous>, transform_indices = @transform_17, window_bounds = array<i64: 1, 8>}, {pipeline_mode = #tpu.pipeline_mode<synchronous>, transform_indices = @transform_18, window_bounds = array<i64: 64, 8>}, {pipeline_mode = #tpu.pipeline_mode<synchronous>, transform_indices = @transform_19, window_bounds = array<i64: 64, 8>}]} {
    %c0_i32 = arith.constant 0 : i32
    %0 = arith.cmpi eq, %arg0, %c0_i32 : i32
    %1 = arith.extui %0 : i1 to i32
    %c0_i32_0 = arith.constant 0 : i32
    %2 = arith.cmpi ne, %1, %c0_i32_0 : i32
    scf.if %2 {
      %c0_55 = arith.constant 0 : index
      %c0_56 = arith.constant 0 : index
      %76 = vector.load %arg1[%c0_55, %c0_56] : memref<96x32xf32, #tpu.memory_space<vmem>>, vector<96x32xf32>
      %77 = vector.extract_strided_slice %76 {offsets = [0, 0], sizes = [64, 32], strides = [1, 1]} : vector<96x32xf32> to vector<64x32xf32>
      %78 = arith.truncf %77 : vector<64x32xf32> to vector<64x32xbf16>
      %c0_57 = arith.constant 0 : index
      %c0_58 = arith.constant 0 : index
      %c0_59 = arith.constant 0 : index
      %79 = vector.load %arg2[%c0_57, %c0_58, %c0_59] : memref<3x32x256xbf16, #tpu.memory_space<vmem>>, vector<1x32x256xbf16>
      %80 = vector.shape_cast %79 : vector<1x32x256xbf16> to vector<32x256xbf16>
      %cst_60 = arith.constant dense<0.000000e+00> : vector<64x256xf32>
      %81 = tpu.matmul %78, %80, %cst_60 {dimension_numbers = #tpu.dot_dimension_numbers<[1], [0], [0], [1], [0, 0, 1, 1], [], []>} : vector<64x32xbf16>, vector<32x256xbf16>, vector<64x256xf32> -> vector<64x256xf32>
      %82 = vector.extract_strided_slice %81 {offsets = [0, 0], sizes = [64, 128], strides = [1, 1]} : vector<64x256xf32> to vector<64x128xf32>
      %c0_61 = arith.constant 0 : index
      %c0_62 = arith.constant 0 : index
      %c0_63 = arith.constant 0 : index
      %83 = vector.load %arg3[%c0_61, %c0_62, %c0_63] : memref<3x1x128xf32, #tpu.memory_space<vmem>>, vector<1x1x128xf32>
      %84 = vector.shape_cast %83 : vector<1x1x128xf32> to vector<1x128xf32>
      %85 = vector.broadcast %84 : vector<1x128xf32> to vector<64x128xf32>
      %86 = arith.addf %82, %85 : vector<64x128xf32>
      %cst_64 = arith.constant 0.000000e+00 : f32
      %87 = vector.broadcast %cst_64 : f32 to vector<64x128xf32>
      %88 = arith.cmpf ogt, %86, %87 : vector<64x128xf32>
      %cst_65 = arith.constant 0.00999999977 : f32
      %89 = vector.broadcast %cst_65 : f32 to vector<64x128xf32>
      %90 = arith.mulf %89, %86 : vector<64x128xf32>
      %91 = arith.select %88, %86, %90 : vector<64x128xi1>, vector<64x128xf32>
      %92 = arith.truncf %91 : vector<64x128xf32> to vector<64x128xbf16>
      %c0_66 = arith.constant 0 : index
      %c0_67 = arith.constant 0 : index
      %c0_68 = arith.constant 0 : index
      %93 = vector.load %arg4[%c0_66, %c0_67, %c0_68] : memref<3x128x128xbf16, #tpu.memory_space<vmem>>, vector<1x128x128xbf16>
      %94 = vector.shape_cast %93 : vector<1x128x128xbf16> to vector<128x128xbf16>
      %cst_69 = arith.constant dense<0.000000e+00> : vector<64x128xf32>
      %95 = tpu.matmul %92, %94, %cst_69 {dimension_numbers = #tpu.dot_dimension_numbers<[1], [0], [0], [1], [0, 0, 1, 1], [], []>} : vector<64x128xbf16>, vector<128x128xbf16>, vector<64x128xf32> -> vector<64x128xf32>
      %96 = vector.extract_strided_slice %81 {offsets = [0, 128], sizes = [64, 128], strides = [1, 1]} : vector<64x256xf32> to vector<64x128xf32>
      %97 = arith.addf %95, %96 : vector<64x128xf32>
      %c0_70 = arith.constant 0 : index
      %c0_71 = arith.constant 0 : index
      %c0_72 = arith.constant 0 : index
      %98 = vector.load %arg5[%c0_70, %c0_71, %c0_72] : memref<3x1x128xf32, #tpu.memory_space<vmem>>, vector<1x1x128xf32>
      %99 = vector.shape_cast %98 : vector<1x1x128xf32> to vector<1x128xf32>
      %100 = vector.broadcast %99 : vector<1x128xf32> to vector<64x128xf32>
      %101 = arith.addf %97, %100 : vector<64x128xf32>
      %c0_73 = arith.constant 0 : index
      %c0_74 = arith.constant 0 : index
      %102 = vector.load %arg21[%c0_73, %c0_74] : memref<96x128xf32, #tpu.memory_space<vmem>>, vector<64x128xf32>
      tpu.vector_store %arg21[%c0_73, %c0_74], %101 {strides = array<i32>} : memref<96x128xf32, #tpu.memory_space<vmem>>, vector<64x128xf32>,
      %103 = vector.extract_strided_slice %76 {offsets = [64, 0], sizes = [16, 32], strides = [1, 1]} : vector<96x32xf32> to vector<16x32xf32>
      %104 = arith.truncf %103 : vector<16x32xf32> to vector<16x32xbf16>
      %c1_75 = arith.constant 1 : index
      %c0_76 = arith.constant 0 : index
      %c0_77 = arith.constant 0 : index
      %105 = vector.load %arg2[%c1_75, %c0_76, %c0_77] : memref<3x32x256xbf16, #tpu.memory_space<vmem>>, vector<1x32x256xbf16>
      %106 = vector.shape_cast %105 : vector<1x32x256xbf16> to vector<32x256xbf16>
      %cst_78 = arith.constant dense<0.000000e+00> : vector<16x256xf32>
      %107 = tpu.matmul %104, %106, %cst_78 {dimension_numbers = #tpu.dot_dimension_numbers<[1], [0], [0], [1], [0, 0, 1, 1], [], []>} : vector<16x32xbf16>, vector<32x256xbf16>, vector<16x256xf32> -> vector<16x256xf32>
      %108 = vector.extract_strided_slice %107 {offsets = [0, 0], sizes = [16, 128], strides = [1, 1]} : vector<16x256xf32> to vector<16x128xf32>
      %c1_79 = arith.constant 1 : index
      %c0_80 = arith.constant 0 : index
      %c0_81 = arith.constant 0 : index
      %109 = vector.load %arg3[%c1_79, %c0_80, %c0_81] : memref<3x1x128xf32, #tpu.memory_space<vmem>>, vector<1x1x128xf32>
      %110 = vector.shape_cast %109 : vector<1x1x128xf32> to vector<1x128xf32>
      %111 = vector.broadcast %110 : vector<1x128xf32> to vector<16x128xf32>
      %112 = arith.addf %108, %111 : vector<16x128xf32>
      %cst_82 = arith.constant 0.000000e+00 : f32
      %113 = vector.broadcast %cst_82 : f32 to vector<16x128xf32>
      %114 = arith.cmpf ogt, %112, %113 : vector<16x128xf32>
      %cst_83 = arith.constant 0.00999999977 : f32
      %115 = vector.broadcast %cst_83 : f32 to vector<16x128xf32>
      %116 = arith.mulf %115, %112 : vector<16x128xf32>
      %117 = arith.select %114, %112, %116 : vector<16x128xi1>, vector<16x128xf32>
      %118 = arith.truncf %117 : vector<16x128xf32> to vector<16x128xbf16>
      %c1_84 = arith.constant 1 : index
      %c0_85 = arith.constant 0 : index
      %c0_86 = arith.constant 0 : index
      %119 = vector.load %arg4[%c1_84, %c0_85, %c0_86] : memref<3x128x128xbf16, #tpu.memory_space<vmem>>, vector<1x128x128xbf16>
      %120 = vector.shape_cast %119 : vector<1x128x128xbf16> to vector<128x128xbf16>
      %cst_87 = arith.constant dense<0.000000e+00> : vector<16x128xf32>
      %121 = tpu.matmul %118, %120, %cst_87 {dimension_numbers = #tpu.dot_dimension_numbers<[1], [0], [0], [1], [0, 0, 1, 1], [], []>} : vector<16x128xbf16>, vector<128x128xbf16>, vector<16x128xf32> -> vector<16x128xf32>
      %122 = vector.extract_strided_slice %107 {offsets = [0, 128], sizes = [16, 128], strides = [1, 1]} : vector<16x256xf32> to vector<16x128xf32>
      %123 = arith.addf %121, %122 : vector<16x128xf32>
      %c1_88 = arith.constant 1 : index
      %c0_89 = arith.constant 0 : index
      %c0_90 = arith.constant 0 : index
      %124 = vector.load %arg5[%c1_88, %c0_89, %c0_90] : memref<3x1x128xf32, #tpu.memory_space<vmem>>, vector<1x1x128xf32>
      %125 = vector.shape_cast %124 : vector<1x1x128xf32> to vector<1x128xf32>
      %126 = vector.broadcast %125 : vector<1x128xf32> to vector<16x128xf32>
      %127 = arith.addf %123, %126 : vector<16x128xf32>
      %c64_91 = arith.constant 64 : index
      %c0_92 = arith.constant 0 : index
      %128 = vector.load %arg21[%c64_91, %c0_92] : memref<96x128xf32, #tpu.memory_space<vmem>>, vector<16x128xf32>
      tpu.vector_store %arg21[%c64_91, %c0_92], %127 {strides = array<i32>} : memref<96x128xf32, #tpu.memory_space<vmem>>, vector<16x128xf32>,
      %129 = vector.extract_strided_slice %76 {offsets = [80, 0], sizes = [16, 32], strides = [1, 1]} : vector<96x32xf32> to vector<16x32xf32>
      %130 = arith.truncf %129 : vector<16x32xf32> to vector<16x32xbf16>
      %c2_93 = arith.constant 2 : index
      %c0_94 = arith.constant 0 : index
      %c0_95 = arith.constant 0 : index
      %131 = vector.load %arg2[%c2_93, %c0_94, %c0_95] : memref<3x32x256xbf16, #tpu.memory_space<vmem>>, vector<1x32x256xbf16>
      %132 = vector.shape_cast %131 : vector<1x32x256xbf16> to vector<32x256xbf16>
      %cst_96 = arith.constant dense<0.000000e+00> : vector<16x256xf32>
      %133 = tpu.matmul %130, %132, %cst_96 {dimension_numbers = #tpu.dot_dimension_numbers<[1], [0], [0], [1], [0, 0, 1, 1], [], []>} : vector<16x32xbf16>, vector<32x256xbf16>, vector<16x256xf32> -> vector<16x256xf32>
      %134 = vector.extract_strided_slice %133 {offsets = [0, 0], sizes = [16, 128], strides = [1, 1]} : vector<16x256xf32> to vector<16x128xf32>
      %c2_97 = arith.constant 2 : index
      %c0_98 = arith.constant 0 : index
      %c0_99 = arith.constant 0 : index
      %135 = vector.load %arg3[%c2_97, %c0_98, %c0_99] : memref<3x1x128xf32, #tpu.memory_space<vmem>>, vector<1x1x128xf32>
      %136 = vector.shape_cast %135 : vector<1x1x128xf32> to vector<1x128xf32>
      %137 = vector.broadcast %136 : vector<1x128xf32> to vector<16x128xf32>
      %138 = arith.addf %134, %137 : vector<16x128xf32>
      %cst_100 = arith.constant 0.000000e+00 : f32
      %139 = vector.broadcast %cst_100 : f32 to vector<16x128xf32>
      %140 = arith.cmpf ogt, %138, %139 : vector<16x128xf32>
      %cst_101 = arith.constant 0.00999999977 : f32
      %141 = vector.broadcast %cst_101 : f32 to vector<16x128xf32>
      %142 = arith.mulf %141, %138 : vector<16x128xf32>
      %143 = arith.select %140, %138, %142 : vector<16x128xi1>, vector<16x128xf32>
      %144 = arith.truncf %143 : vector<16x128xf32> to vector<16x128xbf16>
      %c2_102 = arith.constant 2 : index
      %c0_103 = arith.constant 0 : index
      %c0_104 = arith.constant 0 : index
      %145 = vector.load %arg4[%c2_102, %c0_103, %c0_104] : memref<3x128x128xbf16, #tpu.memory_space<vmem>>, vector<1x128x128xbf16>
      %146 = vector.shape_cast %145 : vector<1x128x128xbf16> to vector<128x128xbf16>
      %cst_105 = arith.constant dense<0.000000e+00> : vector<16x128xf32>
      %147 = tpu.matmul %144, %146, %cst_105 {dimension_numbers = #tpu.dot_dimension_numbers<[1], [0], [0], [1], [0, 0, 1, 1], [], []>} : vector<16x128xbf16>, vector<128x128xbf16>, vector<16x128xf32> -> vector<16x128xf32>
      %148 = vector.extract_strided_slice %133 {offsets = [0, 128], sizes = [16, 128], strides = [1, 1]} : vector<16x256xf32> to vector<16x128xf32>
      %149 = arith.addf %147, %148 : vector<16x128xf32>
      %c2_106 = arith.constant 2 : index
      %c0_107 = arith.constant 0 : index
      %c0_108 = arith.constant 0 : index
      %150 = vector.load %arg5[%c2_106, %c0_107, %c0_108] : memref<3x1x128xf32, #tpu.memory_space<vmem>>, vector<1x1x128xf32>
      %151 = vector.shape_cast %150 : vector<1x1x128xf32> to vector<1x128xf32>
      %152 = vector.broadcast %151 : vector<1x128xf32> to vector<16x128xf32>
      %153 = arith.addf %149, %152 : vector<16x128xf32>
      %c80_109 = arith.constant 80 : index
      %c0_110 = arith.constant 0 : index
      %154 = vector.load %arg21[%c80_109, %c0_110] : memref<96x128xf32, #tpu.memory_space<vmem>>, vector<16x128xf32>
      tpu.vector_store %arg21[%c80_109, %c0_110], %153 {strides = array<i32>} : memref<96x128xf32, #tpu.memory_space<vmem>>, vector<16x128xf32>,
      %cst_111 = arith.constant 0.000000e+00 : f32
      %155 = vector.broadcast %cst_111 : f32 to vector<96x128xf32>
      %c0_112 = arith.constant 0 : index
      %c0_113 = arith.constant 0 : index
      %156 = vector.load %arg22[%c0_112, %c0_113] : memref<96x128xf32, #tpu.memory_space<vmem>>, vector<96x128xf32>
      tpu.vector_store %arg22[%c0_112, %c0_113], %155 {strides = array<i32>} : memref<96x128xf32, #tpu.memory_space<vmem>>, vector<96x128xf32>,
      %cst_114 = arith.constant 0.000000e+00 : f32
      %157 = vector.broadcast %cst_114 : f32 to vector<64x8xf32>
      %c0_115 = arith.constant 0 : index
      %c0_116 = arith.constant 0 : index
      %158 = vector.load %arg20[%c0_115, %c0_116] : memref<64x8xf32, #tpu.memory_space<vmem>>, vector<64x8xf32>
      tpu.vector_store %arg20[%c0_115, %c0_116], %157 {strides = array<i32>} : memref<64x8xf32, #tpu.memory_space<vmem>>, vector<64x8xf32>,
    } else {
    }
    %c0 = arith.constant 0 : index
    %c0_1 = arith.constant 0 : index
    %3 = vector.load %arg21[%c0, %c0_1] : memref<96x128xf32, #tpu.memory_space<vmem>>, vector<96x128xf32>
    %c0_2 = arith.constant 0 : index
    %c0_3 = arith.constant 0 : index
    %4 = vector.load %arg22[%c0_2, %c0_3] : memref<96x128xf32, #tpu.memory_space<vmem>>, vector<96x128xf32>
    %c0_4 = arith.constant 0 : index
    %c0_5 = arith.constant 0 : index
    %5 = vector.load %arg6[%c0_4, %c0_5] : memref<96x96xbf16, #tpu.memory_space<vmem>>, vector<96x96xbf16>
    %6 = arith.truncf %3 : vector<96x128xf32> to vector<96x128xbf16>
    %cst = arith.constant dense<0.000000e+00> : vector<96x128xf32>
    %7 = tpu.matmul %5, %6, %cst {dimension_numbers = #tpu.dot_dimension_numbers<[1], [0], [0], [1], [0, 0, 1, 1], [], []>} : vector<96x96xbf16>, vector<96x128xbf16>, vector<96x128xf32> -> vector<96x128xf32>
    %8 = vector.extract_strided_slice %7 {offsets = [0, 0], sizes = [64, 128], strides = [1, 1]} : vector<96x128xf32> to vector<64x128xf32>
    %9 = vector.extract_strided_slice %4 {offsets = [0, 0], sizes = [64, 128], strides = [1, 1]} : vector<96x128xf32> to vector<64x128xf32>
    %10 = tpu.concatenate %8, %9 in 1 : vector<64x128xf32>, vector<64x128xf32> -> vector<64x256xf32>
    %11 = arith.truncf %10 : vector<64x256xf32> to vector<64x256xbf16>
    %c0_6 = arith.constant 0 : index
    %c0_7 = arith.constant 0 : index
    %c0_8 = arith.constant 0 : index
    %c0_9 = arith.constant 0 : index
    %12 = vector.load %arg7[%c0_6, %c0_7, %c0_8, %c0_9] : memref<1x3x256x128xbf16, #tpu.memory_space<vmem>>, vector<1x1x256x128xbf16>
    %13 = vector.shape_cast %12 : vector<1x1x256x128xbf16> to vector<256x128xbf16>
    %cst_10 = arith.constant dense<0.000000e+00> : vector<64x128xf32>
    %14 = tpu.matmul %11, %13, %cst_10 {dimension_numbers = #tpu.dot_dimension_numbers<[1], [0], [0], [1], [0, 0, 1, 1], [], []>} : vector<64x256xbf16>, vector<256x128xbf16>, vector<64x128xf32> -> vector<64x128xf32>
    %c0_11 = arith.constant 0 : index
    %c0_12 = arith.constant 0 : index
    %c0_13 = arith.constant 0 : index
    %c0_14 = arith.constant 0 : index
    %15 = vector.load %arg8[%c0_11, %c0_12, %c0_13, %c0_14] : memref<1x3x1x128xf32, #tpu.memory_space<vmem>>, vector<1x1x1x128xf32>
    %16 = vector.shape_cast %15 : vector<1x1x1x128xf32> to vector<1x128xf32>
    %17 = vector.broadcast %16 : vector<1x128xf32> to vector<64x128xf32>
    %18 = arith.addf %14, %17 : vector<64x128xf32>
    %19 = math.tanh %18 : vector<64x128xf32>
    %c0_15 = arith.constant 0 : index
    %c0_16 = arith.constant 0 : index
    %c0_17 = arith.constant 0 : index
    %c0_18 = arith.constant 0 : index
    %20 = vector.load %arg9[%c0_15, %c0_16, %c0_17, %c0_18] : memref<1x3x1x128xf32, #tpu.memory_space<vmem>>, vector<1x1x1x128xf32>
    %21 = vector.shape_cast %20 : vector<1x1x1x128xf32> to vector<1x128xf32>
    %22 = vector.broadcast %21 : vector<1x128xf32> to vector<64x128xf32>
    %23 = arith.mulf %19, %22 : vector<64x128xf32>
    %c0_19 = arith.constant 0 : index
    %c0_20 = arith.constant 0 : index
    %24 = vector.load %arg22[%c0_19, %c0_20] : memref<96x128xf32, #tpu.memory_space<vmem>>, vector<64x128xf32>
    tpu.vector_store %arg22[%c0_19, %c0_20], %23 {strides = array<i32>} : memref<96x128xf32, #tpu.memory_space<vmem>>, vector<64x128xf32>,
    %25 = vector.extract_strided_slice %3 {offsets = [0, 0], sizes = [64, 128], strides = [1, 1]} : vector<96x128xf32> to vector<64x128xf32>
    %26 = arith.addf %25, %23 : vector<64x128xf32>
    %c0_21 = arith.constant 0 : index
    %c0_22 = arith.constant 0 : index
    %27 = vector.load %arg21[%c0_21, %c0_22] : memref<96x128xf32, #tpu.memory_space<vmem>>, vector<64x128xf32>
    tpu.vector_store %arg21[%c0_21, %c0_22], %26 {strides = array<i32>} : memref<96x128xf32, #tpu.memory_space<vmem>>, vector<64x128xf32>,
    %28 = vector.extract_strided_slice %7 {offsets = [64, 0], sizes = [16, 128], strides = [1, 1]} : vector<96x128xf32> to vector<16x128xf32>
    %29 = vector.extract_strided_slice %4 {offsets = [64, 0], sizes = [16, 128], strides = [1, 1]} : vector<96x128xf32> to vector<16x128xf32>
    %30 = tpu.concatenate %28, %29 in 1 : vector<16x128xf32>, vector<16x128xf32> -> vector<16x256xf32>
    %31 = arith.truncf %30 : vector<16x256xf32> to vector<16x256xbf16>
    %c0_23 = arith.constant 0 : index
    %c1 = arith.constant 1 : index
    %c0_24 = arith.constant 0 : index
    %c0_25 = arith.constant 0 : index
    %32 = vector.load %arg7[%c0_23, %c1, %c0_24, %c0_25] : memref<1x3x256x128xbf16, #tpu.memory_space<vmem>>, vector<1x1x256x128xbf16>
    %33 = vector.shape_cast %32 : vector<1x1x256x128xbf16> to vector<256x128xbf16>
    %cst_26 = arith.constant dense<0.000000e+00> : vector<16x128xf32>
    %34 = tpu.matmul %31, %33, %cst_26 {dimension_numbers = #tpu.dot_dimension_numbers<[1], [0], [0], [1], [0, 0, 1, 1], [], []>} : vector<16x256xbf16>, vector<256x128xbf16>, vector<16x128xf32> -> vector<16x128xf32>
    %c0_27 = arith.constant 0 : index
    %c1_28 = arith.constant 1 : index
    %c0_29 = arith.constant 0 : index
    %c0_30 = arith.constant 0 : index
    %35 = vector.load %arg8[%c0_27, %c1_28, %c0_29, %c0_30] : memref<1x3x1x128xf32, #tpu.memory_space<vmem>>, vector<1x1x1x128xf32>
    %36 = vector.shape_cast %35 : vector<1x1x1x128xf32> to vector<1x128xf32>
    %37 = vector.broadcast %36 : vector<1x128xf32> to vector<16x128xf32>
    %38 = arith.addf %34, %37 : vector<16x128xf32>
    %39 = math.tanh %38 : vector<16x128xf32>
    %c0_31 = arith.constant 0 : index
    %c1_32 = arith.constant 1 : index
    %c0_33 = arith.constant 0 : index
    %c0_34 = arith.constant 0 : index
    %40 = vector.load %arg9[%c0_31, %c1_32, %c0_33, %c0_34] : memref<1x3x1x128xf32, #tpu.memory_space<vmem>>, vector<1x1x1x128xf32>
    %41 = vector.shape_cast %40 : vector<1x1x1x128xf32> to vector<1x128xf32>
    %42 = vector.broadcast %41 : vector<1x128xf32> to vector<16x128xf32>
    %43 = arith.mulf %39, %42 : vector<16x128xf32>
    %c64 = arith.constant 64 : index
    %c0_35 = arith.constant 0 : index
    %44 = vector.load %arg22[%c64, %c0_35] : memref<96x128xf32, #tpu.memory_space<vmem>>, vector<16x128xf32>
    tpu.vector_store %arg22[%c64, %c0_35], %43 {strides = array<i32>} : memref<96x128xf32, #tpu.memory_space<vmem>>, vector<16x128xf32>,
    %45 = vector.extract_strided_slice %3 {offsets = [64, 0], sizes = [16, 128], strides = [1, 1]} : vector<96x128xf32> to vector<16x128xf32>
    %46 = arith.addf %45, %43 : vector<16x128xf32>
    %c64_36 = arith.constant 64 : index
    %c0_37 = arith.constant 0 : index
    %47 = vector.load %arg21[%c64_36, %c0_37] : memref<96x128xf32, #tpu.memory_space<vmem>>, vector<16x128xf32>
    tpu.vector_store %arg21[%c64_36, %c0_37], %46 {strides = array<i32>} : memref<96x128xf32, #tpu.memory_space<vmem>>, vector<16x128xf32>,
    %48 = vector.extract_strided_slice %7 {offsets = [80, 0], sizes = [16, 128], strides = [1, 1]} : vector<96x128xf32> to vector<16x128xf32>
    %49 = vector.extract_strided_slice %4 {offsets = [80, 0], sizes = [16, 128], strides = [1, 1]} : vector<96x128xf32> to vector<16x128xf32>
    %50 = tpu.concatenate %48, %49 in 1 : vector<16x128xf32>, vector<16x128xf32> -> vector<16x256xf32>
    %51 = arith.truncf %50 : vector<16x256xf32> to vector<16x256xbf16>
    %c0_38 = arith.constant 0 : index
    %c2 = arith.constant 2 : index
    %c0_39 = arith.constant 0 : index
    %c0_40 = arith.constant 0 : index
    %52 = vector.load %arg7[%c0_38, %c2, %c0_39, %c0_40] : memref<1x3x256x128xbf16, #tpu.memory_space<vmem>>, vector<1x1x256x128xbf16>
    %53 = vector.shape_cast %52 : vector<1x1x256x128xbf16> to vector<256x128xbf16>
    %cst_41 = arith.constant dense<0.000000e+00> : vector<16x128xf32>
    %54 = tpu.matmul %51, %53, %cst_41 {dimension_numbers = #tpu.dot_dimension_numbers<[1], [0], [0], [1], [0, 0, 1, 1], [], []>} : vector<16x256xbf16>, vector<256x128xbf16>, vector<16x128xf32> -> vector<16x128xf32>
    %c0_42 = arith.constant 0 : index
    %c2_43 = arith.constant 2 : index
    %c0_44 = arith.constant 0 : index
    %c0_45 = arith.constant 0 : index
    %55 = vector.load %arg8[%c0_42, %c2_43, %c0_44, %c0_45] : memref<1x3x1x128xf32, #tpu.memory_space<vmem>>, vector<1x1x1x128xf32>
    %56 = vector.shape_cast %55 : vector<1x1x1x128xf32> to vector<1x128xf32>
    %57 = vector.broadcast %56 : vector<1x128xf32> to vector<16x128xf32>
    %58 = arith.addf %54, %57 : vector<16x128xf32>
    %59 = math.tanh %58 : vector<16x128xf32>
    %c0_46 = arith.constant 0 : index
    %c2_47 = arith.constant 2 : index
    %c0_48 = arith.constant 0 : index
    %c0_49 = arith.constant 0 : index
    %60 = vector.load %arg9[%c0_46, %c2_47, %c0_48, %c0_49] : memref<1x3x1x128xf32, #tpu.memory_space<vmem>>, vector<1x1x1x128xf32>
    %61 = vector.shape_cast %60 : vector<1x1x1x128xf32> to vector<1x128xf32>
    %62 = vector.broadcast %61 : vector<1x128xf32> to vector<16x128xf32>
    %63 = arith.mulf %59, %62 : vector<16x128xf32>
    %64 = tpu.iota {dimensions = array<i32: 0>} : vector<16x128xi32>
    %c4_i32 = arith.constant 4 : i32
    %65 = vector.broadcast %c4_i32 : i32 to vector<16x128xi32>
    %66 = arith.cmpi slt, %64, %65 : vector<16x128xi32>
    %cst_50 = arith.constant 0.000000e+00 : f32
    %67 = vector.broadcast %cst_50 : f32 to vector<16x128xf32>
    %68 = arith.select %66, %63, %67 : vector<16x128xi1>, vector<16x128xf32>
    %c80 = arith.constant 80 : index
    %c0_51 = arith.constant 0 : index
    %69 = vector.load %arg22[%c80, %c0_51] : memref<96x128xf32, #tpu.memory_space<vmem>>, vector<16x128xf32>
    tpu.vector_store %arg22[%c80, %c0_51], %68 {strides = array<i32>} : memref<96x128xf32, #tpu.memory_space<vmem>>, vector<16x128xf32>,
    %70 = vector.extract_strided_slice %3 {offsets = [80, 0], sizes = [16, 128], strides = [1, 1]} : vector<96x128xf32> to vector<16x128xf32>
    %71 = arith.addf %70, %68 : vector<16x128xf32>
    %c80_52 = arith.constant 80 : index
    %c0_53 = arith.constant 0 : index
    %72 = vector.load %arg21[%c80_52, %c0_53] : memref<96x128xf32, #tpu.memory_space<vmem>>, vector<16x128xf32>
    tpu.vector_store %arg21[%c80_52, %c0_53], %71 {strides = array<i32>} : memref<96x128xf32, #tpu.memory_space<vmem>>, vector<16x128xf32>,
    %c1_i32 = arith.constant 1 : i32
    %73 = arith.cmpi eq, %arg0, %c1_i32 : i32
    %74 = arith.extui %73 : i1 to i32
    %c0_i32_54 = arith.constant 0 : i32
    %75 = arith.cmpi ne, %74, %c0_i32_54 : i32
    scf.if %75 {
      %c0_55 = arith.constant 0 : index
      %c0_56 = arith.constant 0 : index
      %76 = vector.load %arg21[%c0_55, %c0_56] : memref<96x128xf32, #tpu.memory_space<vmem>>, vector<96x128xf32>
      %77 = vector.extract_strided_slice %76 {offsets = [0, 96], sizes = [64, 32], strides = [1, 1]} : vector<96x128xf32> to vector<64x32xf32>
      %78 = vector.extract_strided_slice %76 {offsets = [64, 96], sizes = [32, 32], strides = [1, 1]} : vector<96x128xf32> to vector<32x32xf32>
      %79 = tpu.iota {dimensions = array<i32: 0>} : vector<32x32xi32>
      %c16_i32 = arith.constant 16 : i32
      %80 = vector.broadcast %c16_i32 : i32 to vector<32x32xi32>
      %81 = arith.cmpi slt, %79, %80 : vector<32x32xi32>
      %82 = arith.extui %81 : vector<32x32xi1> to vector<32x32xi32>
      %83 = arith.sitofp %82 : vector<32x32xi32> to vector<32x32xf32>
      %cst_57 = arith.constant 1.000000e+00 : f32
      %84 = vector.broadcast %cst_57 : f32 to vector<32x32xf32>
      %85 = arith.subf %84, %83 : vector<32x32xf32>
      %86 = arith.mulf %78, %83 : vector<32x32xf32>
      %87 = arith.mulf %78, %85 : vector<32x32xf32>
      %88 = tpu.concatenate %86, %87 in 1 : vector<32x32xf32>, vector<32x32xf32> -> vector<32x64xf32>
      %89 = arith.truncf %88 : vector<32x64xf32> to vector<32x64xbf16>
      %c0_58 = arith.constant 0 : index
      %c0_59 = arith.constant 0 : index
      %90 = vector.load %arg10[%c0_58, %c0_59] : memref<64x64xbf16, #tpu.memory_space<vmem>>, vector<64x64xbf16>
      %cst_60 = arith.constant dense<0.000000e+00> : vector<32x64xf32>
      %91 = tpu.matmul %89, %90, %cst_60 {dimension_numbers = #tpu.dot_dimension_numbers<[1], [0], [0], [1], [0, 0, 1, 1], [], []>} : vector<32x64xbf16>, vector<64x64xbf16>, vector<32x64xf32> -> vector<32x64xf32>
      %92 = vector.extract_strided_slice %91 {offsets = [0, 0], sizes = [32, 32], strides = [1, 1]} : vector<32x64xf32> to vector<32x32xf32>
      %c0_61 = arith.constant 0 : index
      %c0_62 = arith.constant 0 : index
      %93 = vector.load %arg11[%c0_61, %c0_62] : memref<32x32xf32, #tpu.memory_space<vmem>>, vector<32x32xf32>
      %94 = arith.addf %92, %93 : vector<32x32xf32>
      %cst_63 = arith.constant 0.000000e+00 : f32
      %95 = vector.broadcast %cst_63 : f32 to vector<32x32xf32>
      %96 = arith.cmpf ogt, %94, %95 : vector<32x32xf32>
      %cst_64 = arith.constant 0.00999999977 : f32
      %97 = vector.broadcast %cst_64 : f32 to vector<32x32xf32>
      %98 = arith.mulf %97, %94 : vector<32x32xf32>
      %99 = arith.select %96, %94, %98 : vector<32x32xi1>, vector<32x32xf32>
      %100 = arith.mulf %99, %83 : vector<32x32xf32>
      %101 = arith.mulf %99, %85 : vector<32x32xf32>
      %102 = tpu.concatenate %100, %101 in 1 : vector<32x32xf32>, vector<32x32xf32> -> vector<32x64xf32>
      %103 = arith.truncf %102 : vector<32x64xf32> to vector<32x64xbf16>
      %c0_65 = arith.constant 0 : index
      %c0_66 = arith.constant 0 : index
      %104 = vector.load %arg12[%c0_65, %c0_66] : memref<64x32xbf16, #tpu.memory_space<vmem>>, vector<64x32xbf16>
      %cst_67 = arith.constant dense<0.000000e+00> : vector<32x32xf32>
      %105 = tpu.matmul %103, %104, %cst_67 {dimension_numbers = #tpu.dot_dimension_numbers<[1], [0], [0], [1], [0, 0, 1, 1], [], []>} : vector<32x64xbf16>, vector<64x32xbf16>, vector<32x32xf32> -> vector<32x32xf32>
      %106 = vector.extract_strided_slice %91 {offsets = [0, 32], sizes = [32, 32], strides = [1, 1]} : vector<32x64xf32> to vector<32x32xf32>
      %107 = arith.addf %105, %106 : vector<32x32xf32>
      %c0_68 = arith.constant 0 : index
      %c0_69 = arith.constant 0 : index
      %108 = vector.load %arg13[%c0_68, %c0_69] : memref<32x32xf32, #tpu.memory_space<vmem>>, vector<32x32xf32>
      %109 = arith.addf %107, %108 : vector<32x32xf32>
      %c0_70 = arith.constant 0 : index
      %c0_71 = arith.constant 0 : index
      %110 = vector.load %arg14[%c0_70, %c0_71] : memref<64x32xbf16, #tpu.memory_space<vmem>>, vector<64x32xbf16>
      %111 = arith.mulf %109, %83 : vector<32x32xf32>
      %112 = arith.mulf %109, %85 : vector<32x32xf32>
      %113 = tpu.concatenate %111, %112 in 1 : vector<32x32xf32>, vector<32x32xf32> -> vector<32x64xf32>
      %114 = arith.truncf %113 : vector<32x64xf32> to vector<32x64xbf16>
      %cst_72 = arith.constant dense<0.000000e+00> : vector<64x64xf32>
      %115 = tpu.matmul %110, %114, %cst_72 {dimension_numbers = #tpu.dot_dimension_numbers<[1], [0], [0], [1], [0, 0, 1, 1], [], []>} : vector<64x32xbf16>, vector<32x64xbf16>, vector<64x64xf32> -> vector<64x64xf32>
      %116 = tpu.concatenate %77, %115 in 1 : vector<64x32xf32>, vector<64x64xf32> -> vector<64x96xf32>
      %117 = arith.truncf %116 : vector<64x96xf32> to vector<64x96xbf16>
      %c0_73 = arith.constant 0 : index
      %c0_74 = arith.constant 0 : index
      %118 = vector.load %arg15[%c0_73, %c0_74] : memref<96x40xbf16, #tpu.memory_space<vmem>>, vector<96x40xbf16>
      %cst_75 = arith.constant dense<0.000000e+00> : vector<64x40xf32>
      %119 = tpu.matmul %117, %118, %cst_75 {dimension_numbers = #tpu.dot_dimension_numbers<[1], [0], [0], [1], [0, 0, 1, 1], [], []>} : vector<64x96xbf16>, vector<96x40xbf16>, vector<64x40xf32> -> vector<64x40xf32>
      %120 = vector.extract_strided_slice %119 {offsets = [0, 0], sizes = [64, 32], strides = [1, 1]} : vector<64x40xf32> to vector<64x32xf32>
      %c0_76 = arith.constant 0 : index
      %c0_77 = arith.constant 0 : index
      %121 = vector.load %arg16[%c0_76, %c0_77] : memref<1x32xf32, #tpu.memory_space<vmem>>, vector<1x32xf32>
      %122 = vector.broadcast %121 : vector<1x32xf32> to vector<64x32xf32>
      %123 = arith.addf %120, %122 : vector<64x32xf32>
      %cst_78 = arith.constant 0.000000e+00 : f32
      %124 = vector.broadcast %cst_78 : f32 to vector<64x32xf32>
      %125 = arith.cmpf ogt, %123, %124 : vector<64x32xf32>
      %cst_79 = arith.constant 0.00999999977 : f32
      %126 = vector.broadcast %cst_79 : f32 to vector<64x32xf32>
      %127 = arith.mulf %126, %123 : vector<64x32xf32>
      %128 = arith.select %125, %123, %127 : vector<64x32xi1>, vector<64x32xf32>
      %129 = arith.truncf %128 : vector<64x32xf32> to vector<64x32xbf16>
      %c0_80 = arith.constant 0 : index
      %c0_81 = arith.constant 0 : index
      %130 = vector.load %arg17[%c0_80, %c0_81] : memref<32x8xbf16, #tpu.memory_space<vmem>>, vector<32x8xbf16>
      %cst_82 = arith.constant dense<0.000000e+00> : vector<64x8xf32>
      %131 = tpu.matmul %129, %130, %cst_82 {dimension_numbers = #tpu.dot_dimension_numbers<[1], [0], [0], [1], [0, 0, 1, 1], [], []>} : vector<64x32xbf16>, vector<32x8xbf16>, vector<64x8xf32> -> vector<64x8xf32>
      %132 = vector.extract_strided_slice %119 {offsets = [0, 32], sizes = [64, 8], strides = [1, 1]} : vector<64x40xf32> to vector<64x8xf32>
      %133 = arith.addf %131, %132 : vector<64x8xf32>
      %c0_83 = arith.constant 0 : index
      %c0_84 = arith.constant 0 : index
      %134 = vector.load %arg18[%c0_83, %c0_84] : memref<1x8xf32, #tpu.memory_space<vmem>>, vector<1x8xf32>
      %135 = vector.broadcast %134 : vector<1x8xf32> to vector<64x8xf32>
      %136 = arith.addf %133, %135 : vector<64x8xf32>
      %c0_85 = arith.constant 0 : index
      %c0_86 = arith.constant 0 : index
      %137 = vector.load %arg19[%c0_85, %c0_86] : memref<64x8xf32, #tpu.memory_space<vmem>>, vector<64x8xf32>
      %cst_87 = arith.constant 3.000000e-01 : f32
      %138 = vector.broadcast %cst_87 : f32 to vector<64x8xf32>
      %139 = arith.mulf %138, %137 : vector<64x8xf32>
      %140 = arith.addf %136, %139 : vector<64x8xf32>
      %c0_88 = arith.constant 0 : index
      %c0_89 = arith.constant 0 : index
      %141 = vector.load %arg20[%c0_88, %c0_89] : memref<64x8xf32, #tpu.memory_space<vmem>>, vector<64x8xf32>
      tpu.vector_store %arg20[%c0_88, %c0_89], %140 {strides = array<i32>} : memref<64x8xf32, #tpu.memory_space<vmem>>, vector<64x8xf32>,
    } else {
    }
    return
  }
  func.func @transform_0(%arg0: i32) -> (i32, i32) {
    %c0_i32 = arith.constant 0 : i32
    %c0_i32_0 = arith.constant 0 : i32
    %c0_i32_1 = arith.constant 0 : i32
    return %c0_i32, %c0_i32_0 : i32, i32
  }
  func.func @transform_1(%arg0: i32) -> (i32, i32, i32) {
    %c0_i32 = arith.constant 0 : i32
    %c0_i32_0 = arith.constant 0 : i32
    %c0_i32_1 = arith.constant 0 : i32
    %c0_i32_2 = arith.constant 0 : i32
    return %c0_i32, %c0_i32_0, %c0_i32_1 : i32, i32, i32
  }
  func.func @transform_2(%arg0: i32) -> (i32, i32, i32) {
    %c0_i32 = arith.constant 0 : i32
    %c0_i32_0 = arith.constant 0 : i32
    %c0_i32_1 = arith.constant 0 : i32
    %c0_i32_2 = arith.constant 0 : i32
    return %c0_i32, %c0_i32_0, %c0_i32_1 : i32, i32, i32
  }
  func.func @transform_3(%arg0: i32) -> (i32, i32, i32) {
    %c0_i32 = arith.constant 0 : i32
    %c0_i32_0 = arith.constant 0 : i32
    %c0_i32_1 = arith.constant 0 : i32
    %c0_i32_2 = arith.constant 0 : i32
    return %c0_i32, %c0_i32_0, %c0_i32_1 : i32, i32, i32
  }
  func.func @transform_4(%arg0: i32) -> (i32, i32, i32) {
    %c0_i32 = arith.constant 0 : i32
    %c0_i32_0 = arith.constant 0 : i32
    %c0_i32_1 = arith.constant 0 : i32
    %c0_i32_2 = arith.constant 0 : i32
    return %c0_i32, %c0_i32_0, %c0_i32_1 : i32, i32, i32
  }
  func.func @transform_5(%arg0: i32) -> (i32, i32) {
    %c0_i32 = arith.constant 0 : i32
    %c0_i32_0 = arith.constant 0 : i32
    %c0_i32_1 = arith.constant 0 : i32
    return %c0_i32, %c0_i32_0 : i32, i32
  }
  func.func @transform_6(%arg0: i32) -> (i32, i32, i32, i32) {
    %c0_i32 = arith.constant 0 : i32
    %c0_i32_0 = arith.constant 0 : i32
    %c0_i32_1 = arith.constant 0 : i32
    %c0_i32_2 = arith.constant 0 : i32
    return %arg0, %c0_i32, %c0_i32_0, %c0_i32_1 : i32, i32, i32, i32
  }
  func.func @transform_7(%arg0: i32) -> (i32, i32, i32, i32) {
    %c0_i32 = arith.constant 0 : i32
    %c0_i32_0 = arith.constant 0 : i32
    %c0_i32_1 = arith.constant 0 : i32
    %c0_i32_2 = arith.constant 0 : i32
    return %arg0, %c0_i32, %c0_i32_0, %c0_i32_1 : i32, i32, i32, i32
  }
  func.func @transform_8(%arg0: i32) -> (i32, i32, i32, i32) {
    %c0_i32 = arith.constant 0 : i32
    %c0_i32_0 = arith.constant 0 : i32
    %c0_i32_1 = arith.constant 0 : i32
    %c0_i32_2 = arith.constant 0 : i32
    return %arg0, %c0_i32, %c0_i32_0, %c0_i32_1 : i32, i32, i32, i32
  }
  func.func @transform_9(%arg0: i32) -> (i32, i32) {
    %c0_i32 = arith.constant 0 : i32
    %c0_i32_0 = arith.constant 0 : i32
    %c0_i32_1 = arith.constant 0 : i32
    return %c0_i32, %c0_i32_0 : i32, i32
  }
  func.func @transform_10(%arg0: i32) -> (i32, i32) {
    %c0_i32 = arith.constant 0 : i32
    %c0_i32_0 = arith.constant 0 : i32
    %c0_i32_1 = arith.constant 0 : i32
    return %c0_i32, %c0_i32_0 : i32, i32
  }
  func.func @transform_11(%arg0: i32) -> (i32, i32) {
    %c0_i32 = arith.constant 0 : i32
    %c0_i32_0 = arith.constant 0 : i32
    %c0_i32_1 = arith.constant 0 : i32
    return %c0_i32, %c0_i32_0 : i32, i32
  }
  func.func @transform_12(%arg0: i32) -> (i32, i32) {
    %c0_i32 = arith.constant 0 : i32
    %c0_i32_0 = arith.constant 0 : i32
    %c0_i32_1 = arith.constant 0 : i32
    return %c0_i32, %c0_i32_0 : i32, i32
  }
  func.func @transform_13(%arg0: i32) -> (i32, i32) {
    %c0_i32 = arith.constant 0 : i32
    %c0_i32_0 = arith.constant 0 : i32
    %c0_i32_1 = arith.constant 0 : i32
    return %c0_i32, %c0_i32_0 : i32, i32
  }
  func.func @transform_14(%arg0: i32) -> (i32, i32) {
    %c0_i32 = arith.constant 0 : i32
    %c0_i32_0 = arith.constant 0 : i32
    %c0_i32_1 = arith.constant 0 : i32
    return %c0_i32, %c0_i32_0 : i32, i32
  }
  func.func @transform_15(%arg0: i32) -> (i32, i32) {
    %c0_i32 = arith.constant 0 : i32
    %c0_i32_0 = arith.constant 0 : i32
    %c0_i32_1 = arith.constant 0 : i32
    return %c0_i32, %c0_i32_0 : i32, i32
  }
  func.func @transform_16(%arg0: i32) -> (i32, i32) {
    %c0_i32 = arith.constant 0 : i32
    %c0_i32_0 = arith.constant 0 : i32
    %c0_i32_1 = arith.constant 0 : i32
    return %c0_i32, %c0_i32_0 : i32, i32
  }
  func.func @transform_17(%arg0: i32) -> (i32, i32) {
    %c0_i32 = arith.constant 0 : i32
    %c0_i32_0 = arith.constant 0 : i32
    %c0_i32_1 = arith.constant 0 : i32
    return %c0_i32, %c0_i32_0 : i32, i32
  }
  func.func @transform_18(%arg0: i32) -> (i32, i32) {
    %c0_i32 = arith.constant 0 : i32
    %c0_i32_0 = arith.constant 0 : i32
    %c0_i32_1 = arith.constant 0 : i32
    return %c0_i32, %c0_i32_0 : i32, i32
  }
  func.func @transform_19(%arg0: i32) -> (i32, i32) {
    %c0_i32 = arith.constant 0 : i32
    %c0_i32_0 = arith.constant 0 : i32
    %c0_i32_1 = arith.constant 0 : i32
    return %c0_i32, %c0_i32_0 : i32, i32
  }
}

</mosaic_0001>

<bundles_post_ra>
// kernel: multi_res_gcn_forward.1
= control target key start
LH: loop header
LB: loop body
LE: loop exit
PB: predicated region body
PF: predicated region fallthrough
CT: control target
= control target key end

     0   :  { %s4763_s0 = inlined_call_operand.vmem [shape: f32[96,32], index: 0, kind: input, shape index: {}]   ;;  %s4764_s1 = inlined_call_operand.vmem [shape: bf16[3,32,256], index: 1, kind: input, shape index: {}]   ;;  %s4765_s2 = inlined_call_operand.vmem [shape: f32[3,1,128], index: 2, kind: input, shape index: {}]   ;;  %s4766_s3 = inlined_call_operand.vmem [shape: bf16[3,128,128], index: 3, kind: input, shape index: {}]   ;;  %s4767_s4 = inlined_call_operand.vmem [shape: f32[3,1,128], index: 4, kind: input, shape index: {}]   ;;  %s4768_s5 = inlined_call_operand.vmem [shape: bf16[96,96], index: 5, kind: input, shape index: {}]   ;;  %s4769_s6 = inlined_call_operand.vmem [shape: bf16[2,3,256,128], index: 6, kind: input, shape index: {}]   ;;  %s4770_s7 = inlined_call_operand.vmem [shape: f32[2,3,1,128], index: 7, kind: input, shape index: {}]   ;;  %s4771_s8 = inlined_call_operand.vmem [shape: f32[2,3,1,128], index: 8, kind: input, shape index: {}]   ;;  %s4772_s9 = inlined_call_operand.vmem [shape: bf16[64,64], index: 9, kind: input, shape index: {}]   ;;  %s4773_s10 = inlined_call_operand.vmem [shape: f32[32,32], index: 10, kind: input, shape index: {}]   ;;  %s4774_s11 = inlined_call_operand.vmem [shape: bf16[64,32], index: 11, kind: input, shape index: {}]   ;;  %s4775_s12 = inlined_call_operand.vmem [shape: f32[32,32], index: 12, kind: input, shape index: {}]   ;;  %s4776_s13 = inlined_call_operand.vmem [shape: bf16[64,32], index: 13, kind: input, shape index: {}]   ;;  %s4777_s14 = inlined_call_operand.vmem [shape: bf16[96,40], index: 14, kind: input, shape index: {}]   ;;  %s4778_s15 = inlined_call_operand.vmem [shape: f32[1,32], index: 15, kind: input, shape index: {}]   ;;  %s4779_s16 = inlined_call_operand.vmem [shape: bf16[32,8], index: 16, kind: input, shape index: {}]   ;;  %s4780_s17 = inlined_call_operand.vmem [shape: f32[1,8], index: 17, kind: input, shape index: {}]   ;;  %s4781_s18 = inlined_call_operand.vmem [shape: f32[64,8], index: 18, kind: input, shape index: {}]   ;;  %s4782_s19 = inlined_call_operand.vmem [shape: f32[64,8], index: 19, kind: output, shape index: {}]  }
   0x1   :  { %4788 = sst [smem:[#allocation5_spill]] %s4763_s0  ;;  %s4086_s0 = smov 0  }
   0x2   :  { %4789 = sst [smem:[#allocation6_spill]] %s4764_s1 }
   0x3   :  { %4790 = sst [smem:[#allocation7_spill]] %s4765_s2 }
   0x4   :  { %4791 = sst [smem:[#allocation8_spill]] %s4766_s3 }
   0x5   :  { %4792 = sst [smem:[#allocation9_spill]] %s4769_s6 }
   0x6   :  { %4793 = sst [smem:[#allocation10_spill]] %s4780_s17 }
   0x7 LB: > { %4794 = sst [smem:[#allocation4_spill]] %s3977_s0  ;;  %s4092_s30 = sadd.s32 4294967295, %s3977_s0   ;;  %s3977_s0 = sphi %s4086_s0, %s29_s0  }
   0x8   : > { %p3150_p0 = scmp.ge.s32.totalorder %s3977_s0, 1  ;;  %p550_p1 = scmp.lt.s32.totalorder %s3977_s0, 3 }
   0xa   : > { %p551_p2 = pnand %p3150_p0, %p550_p1 }
   0xb   : > { %p609_p3 = scmp.lt.s32.totalorder (!%p551_p2), %s4092_s30, 1  ;;  %s4795_s6 = sld [smem:[#allocation9_spill]] (!%p551_p2) }
   0xc   : > { %554 = sbr.rel (%p551_p2) target bundleno = 2501 (0x9c5), region = 96  ;;  %p3152_p4 = scmp.ne.s32.totalorder (!%p551_p2), %s4092_s30, 0 }
  0x11   : > { %s610_s20 = scalar_select %p609_p3, %s4092_s30, 1 }
  0x12   : > { %626 = sbr.rel (%p3152_p4) target bundleno = 479 (0x1df), region = 100  ;;  %s4796_s0 = sld [smem:[#allocation6_spill]] (!%p3152_p4) }
  0x13   : > { %s3736_s21 = smul.u32 384, %s610_s20  ;;  %s4799_s24 = sld [smem:[#allocation8_spill]] (!%p3152_p4) }
  0x14   : > { %s3737_s1 = smul.u32 3, %s610_s20  ;;  %s4798_s20 = sld [smem:[#allocation5_spill]] (!%p3152_p4) }
  0x15   : > { %s4101_s23 = scalar_lea.vmem %s4795_s6, %s3736_s21  ;;  %s4800_s25 = sld [smem:[#allocation7_spill]] (!%p3152_p4) }
  0x16   : > { %s4106_s3 = scalar_lea.vmem %s4770_s7, %s3737_s1  ;;  %s4111_s28 = scalar_lea.vmem %s4771_s8, %s3737_s1 }
  0x17   : > { %v3979_v2 = vmov 0   ;;  %vm1374_vm0 = vcmask 64512   ;;  %v3980_v5 = vmov 0.0   ;;  %vm667_vm1 = vcmask 261120  }
  0x18   : > { %s4797_s17 = smov %s4796_s0  ;;  %v3753_v0 = vld [vmem:[%s4796_s0 + $0x14] ss:$8 sps:$4 sm:$0xff]   ;;  %712 = vmatprep.mubr.bf16.mxu1 %v3979_v2  ;;  %1009 = vmatprep.mubr.bf16.mxu0 %v3979_v2  ;;  %1362 = vst [vmem:[#allocation3 + $0x48] sm:$0xff] %v3980_v5  ;;  %1363 = vst [vmem:[#allocation3] sm:$0xff] %v3980_v5  ;;  %vm3981_vm2 = vmmov 0  }
  0x19   : > { %v3755_v1 = vld [vmem:[%s4797_s17 + $0x34] ss:$8 sps:$4 sm:$0xff]   ;;  %692 = vmatprep.subr.bf16.mxu1 %v3753_v0  ;;  %v3757_v3 = vld [vmem:[%s4797_s17 + $0x10] ss:$8 sps:$4 sm:$0xff]   ;;  %1364 = vst [vmem:[#allocation3 + $0x50] sm:$0xff] %v3980_v5  ;;  %1365 = vst [vmem:[#allocation3 + $0x30] sm:$0xff] %v3980_v5 }
  0x1a   : > { %v3758_v4 = vld [vmem:[%s4797_s17 + $0x30] ss:$8 sps:$4 sm:$0xff]   ;;  %1366 = vst [vmem:[#allocation3 + $0x8] sm:$0xff] %v3980_v5  ;;  %1367 = vst [vmem:[#allocation3 + $0x20] sm:$0xff] %v3980_v5  ;;  %989 = vmatprep.subr.bf16.mxu0 %v3755_v1  ;;  %v3759_v6 = vld [vmem:[%s4797_s17 + $0x4] ss:$8 sps:$4 sm:$0xff]   ;;  %693 = vmatpush1.bf16.msra.mxu1 %v3757_v3 }
  0x1b   : > { %1368 = vst [vmem:[#allocation3 + $0x18] sm:$0xff] %v3980_v5  ;;  %1369 = vst [vmem:[#allocation3 + $0x40] sm:$0xff] %v3980_v5  ;;  %990 = vmatpush1.bf16.msra.mxu0 %v3758_v4  ;;  %v3761_v7 = vld [vmem:[%s4797_s17 + $0x24] ss:$8 sps:$4 sm:$0xff]   ;;  %v3763_v8 = vld [vmem:[%s4797_s17] ss:$8 sps:$4 sm:$0xff]   ;;  %694 = vmatprep.subr.bf16.mxu1 %v3759_v6 }
  0x1c   : > { %1370 = vst [vmem:[#allocation3 + $0x38] sm:$0xff] %v3980_v5  ;;  %1371 = vst [vmem:[#allocation3 + $0x28] sm:$0xff] %v3980_v5  ;;  %v3764_v9 = vld [vmem:[%s4797_s17 + $0x20] ss:$8 sps:$4 sm:$0xff]   ;;  %991 = vmatprep.subr.bf16.mxu0 %v3761_v7  ;;  %v3767_v16 = vld [vmem:[%s4797_s17 + $0x54] ss:$8 sps:$4 sm:$0xff]  }
  0x1d   : > { %1372 = vst [vmem:[#allocation3 + $0x58] sm:$0xff] %v3980_v5  ;;  %1373 = vst [vmem:[#allocation3 + $0x10] sm:$0xff] %v3980_v5  ;;  %v627_v10 = vld [vmem:[%s4798_s20] sm:$0xff]  ;;  %v628_v11 = vld [vmem:[%s4798_s20 + $0x8] sm:$0xff] }
  0x1e   : > { %1375 = vst.msk [vmem:[%s4782_s19] sm:$0xff] %vm1374_vm0, %v3980_v5  ;;  %1376 = vst.msk [vmem:[%s4782_s19 + $0x8] sm:$0xff] %vm1374_vm0, %v3980_v5  ;;  %v635_v12 = vld [vmem:[%s4798_s20 + $0x40] sm:$0xff]  ;;  %v636_v13 = vld [vmem:[%s4798_s20 + $0x48] sm:$0xff]  ;;  %v639_v14 = vpack.c.bf16 %v628_v11, %v627_v10  ;;  %695 = vmatpush1.bf16.msra.mxu1 %v3763_v8 }
  0x1f   : > { %1377 = vst.msk [vmem:[%s4782_s19 + $0x10] sm:$0xff] %vm1374_vm0, %v3980_v5  ;;  %1378 = vst.msk [vmem:[%s4782_s19 + $0x18] sm:$0xff] %vm1374_vm0, %v3980_v5  ;;  %v948_v15 = vpack.c.bf16 %v636_v13, %v635_v12  ;;  %992 = vmatpush1.bf16.msra.mxu0 %v3764_v9  ;;  %v3765_v17 = vld [vmem:[%s4797_s17 + $0x50] ss:$8 sps:$4 sm:$0xff]   ;;  %v3770_v18 = vld [vmem:[%s4797_s17 + $0x44] ss:$8 sps:$4 sm:$0xff]  }
  0x20   : > { %1379 = vst.msk [vmem:[%s4782_s19 + $0x20] sm:$0xff] %vm1374_vm0, %v3980_v5  ;;  %1380 = vst.msk [vmem:[%s4782_s19 + $0x28] sm:$0xff] %vm1374_vm0, %v3980_v5  ;;  %1196 = vmatprep.subr.bf16.mxu0 %v3767_v16  ;;  %v3768_v19 = vld [vmem:[%s4797_s17 + $0x40] ss:$8 sps:$4 sm:$0xff]   ;;  %v629_v20 = vld [vmem:[%s4798_s20 + $0x10] sm:$0xff] }
  0x21   : > { %1381 = vst.msk [vmem:[%s4782_s19 + $0x30] sm:$0xff] %vm1374_vm0, %v3980_v5  ;;  %1382 = vst.msk [vmem:[%s4782_s19 + $0x38] sm:$0xff] %vm1374_vm0, %v3980_v5  ;;  %3157 = vmatmul.mubr.msk.bf16.vlgmr.msra.gmra.mxu1 %vm667_vm1, %v639_v14  ;;  %v630_v21 = vld [vmem:[%s4798_s20 + $0x18] sm:$0xff]  ;;  %v637_v22 = vld [vmem:[%s4798_s20 + $0x50] sm:$0xff] }
  0x22   : > { %3179 = vmatmul.mubr.msk.bf16.vlgmr.msra.gmra.mxu0 %vm667_vm1, %v948_v15  ;;  %v638_v23 = vld [vmem:[%s4798_s20 + $0x58] sm:$0xff]  ;;  %722 = vmatprep.mubr.bf16.mxu1 %v3979_v2  ;;  %v3773_v25 = vld [vmem:[%s4799_s24 + $0x30] sm:$0xff]   ;;  %v640_v26 = vpack.c.bf16 %v630_v21, %v629_v20  ;;  %v631_v29 = vld [vmem:[%s4798_s20 + $0x20] sm:$0xff] }
  0x23   : > { %1197 = vmatpush1.bf16.msra.mxu0 %v3765_v17  ;;  %v3771_v24 = vld [vmem:[%s4799_s24 + $0x38] sm:$0xff]   ;;  %1216 = vmatprep.mubr.bf16.mxu0 %v3979_v2  ;;  %v1155_v27 = vpack.c.bf16 %v638_v23, %v637_v22  ;;  %v632_v30 = vld [vmem:[%s4798_s20 + $0x28] sm:$0xff]  ;;  %v3774_v31 = vld [vmem:[%s4799_s24 + $0xb0] sm:$0xff]  }
  0x24   : > { %1198 = vmatprep.subr.bf16.mxu0 %v3770_v18  ;;  %3580 = vmatprep.subr.bf16.mxu1 %v3771_v24  ;;  %v3772_v28 = vld [vmem:[%s4799_s24 + $0xb8] sm:$0xff]   ;;  %v3775_v32 = vld [vmem:[%s4799_s24 + $0x28] sm:$0xff]   ;;  %v3777_v33 = vld [vmem:[%s4799_s24 + $0x20] sm:$0xff]   ;;  %v641_v35 = vpack.c.bf16 %v632_v30, %v631_v29 }
  0x25   : > { %3581 = vmatpush3.bf16.msra.mxu1 %v3771_v24  ;;  %v3776_v34 = vld [vmem:[%s4799_s24 + $0xa8] sm:$0xff]   ;;  %v633_v36 = vld [vmem:[%s4798_s20 + $0x30] sm:$0xff]  ;;  %v634_v37 = vld [vmem:[%s4798_s20 + $0x38] sm:$0xff] }
  0x26   : > { %3582 = vmatprep.subr.bf16.mxu1 %v3773_v25  ;;  %v642_v38 = vpack.c.bf16 %v634_v37, %v633_v36  ;;  %v3778_v39 = vld [vmem:[%s4799_s24 + $0xa0] sm:$0xff]   ;;  %v3779_v40 = vld [vmem:[%s4799_s24 + $0x18] sm:$0xff]   ;;  %v3781_v42 = vld [vmem:[%s4799_s24 + $0x10] sm:$0xff]  }
  0x27   : > { %1199 = vmatpush1.bf16.msra.mxu0 %v3768_v19  ;;  %v3780_v41 = vld [vmem:[%s4799_s24 + $0x98] sm:$0xff]   ;;  %v3782_v43 = vld [vmem:[%s4799_s24 + $0x90] sm:$0xff]   ;;  %v3783_v44 = vld [vmem:[%s4799_s24 + $0x8] sm:$0xff]  }
  0x28   : > { %3624 = vmatprep.subr.bf16.mxu0 %v3980_v5  ;;  %v3784_v45 = vld [vmem:[%s4799_s24 + $0x88] sm:$0xff]   ;;  %v3785_v46 = vld [vmem:[%s4799_s24] sm:$0xff]   ;;  %v3787_v23 = vld [vmem:[%s4799_s24 + $0x78] sm:$0xff]  }
  0x29   : > { %3158 = vmatmul.mubr.msk.bf16.gmra.mxu1 %vm667_vm1, %v640_v26  ;;  %v3786_v47 = vld [vmem:[%s4799_s24 + $0x80] sm:$0xff]   ;;  %v3788_v30 = vld [vmem:[%s4799_s24 + $0x70] sm:$0xff]   ;;  %v3789_v36 = vld [vmem:[%s4799_s24 + $0x68] sm:$0xff]  }
  0x2a   : > { %3216 = vmatmul.mubr.msk.bf16.vlgmr.msra.gmra.mxu0 %vm667_vm1, %v1155_v27  ;;  %732 = vmatprep.mubr.bf16.mxu1 %v3979_v2  ;;  %v4312_v48 = vld [vmem:[%s4800_s25] ss:$0 sm:$0xff]  ;;  %v3218_v60 = vld [vmem:[%s4800_s25 + $0x2] ss:$0 sm:$0xff] }
  0x2b   : > { %3625 = vmatpush3.bf16.msra.mxu0 %v3772_v28  ;;  %3583 = vmatpush3.bf16.msra.mxu1 %v3773_v25 }
  0x2c   : > { %3626 = vmatprep.subr.bf16.mxu0 %v3980_v5  ;;  %3584 = vmatprep.subr.bf16.mxu1 %v3775_v32 }
  0x2d   : > { %3640 = vmatprep.mubr.msk.bf16.mxu0 %vm3981_vm2, %v3980_v5 }
  0x2f   : > { %3627 = vmatpush3.bf16.msra.mxu0 %v3774_v31  ;;  %3585 = vmatpush3.bf16.msra.mxu1 %v3775_v32 }
  0x30   : > { %3628 = vmatprep.subr.bf16.mxu0 %v3980_v5  ;;  %3586 = vmatprep.subr.bf16.mxu1 %v3777_v33 }
  0x31   : > { %3159 = vmatmul.mubr.msk.bf16.gmra.mxu1 %vm667_vm1, %v641_v35 }
  0x32   : > { %742 = vmatprep.mubr.bf16.mxu1 %v3979_v2 }
  0x33   : > { %3629 = vmatpush3.bf16.msra.mxu0 %v3776_v34  ;;  %3587 = vmatpush3.bf16.msra.mxu1 %v3777_v33 }
  0x34   : > { %3630 = vmatprep.subr.bf16.mxu0 %v3980_v5  ;;  %3588 = vmatprep.subr.bf16.mxu1 %v3779_v40 }
  0x37   : > { %3631 = vmatpush3.bf16.msra.mxu0 %v3778_v39  ;;  %3589 = vmatpush3.bf16.msra.mxu1 %v3779_v40 }
  0x38   : > { %3632 = vmatprep.subr.bf16.mxu0 %v3980_v5  ;;  %3590 = vmatprep.subr.bf16.mxu1 %v3781_v42 }
  0x39   : > { %3160 = vmatmul.mubr.msk.bf16.gmra.mxu1 %vm667_vm1, %v642_v38 }
  0x3b   : > { %3633 = vmatpush3.bf16.msra.mxu0 %v3780_v41  ;;  %3591 = vmatpush3.bf16.msra.mxu1 %v3781_v42 }
  0x3c   : > { %3634 = vmatprep.subr.bf16.mxu0 %v3980_v5  ;;  %3592 = vmatprep.subr.bf16.mxu1 %v3783_v44 }
  0x3f   : > { %3635 = vmatpush3.bf16.msra.mxu0 %v3782_v43  ;;  %3593 = vmatpush3.bf16.msra.mxu1 %v3783_v44  ;;  %v3790_v43 = vld [vmem:[%s4799_s24 + $0x60] sm:$0xff]  }
  0x40   : > { %3636 = vmatprep.subr.bf16.mxu0 %v3980_v5  ;;  %3594 = vmatprep.subr.bf16.mxu1 %v3785_v46 }
  0x43   : > { %3637 = vmatpush3.bf16.msra.mxu0 %v3784_v45  ;;  %3595 = vmatpush3.bf16.msra.mxu1 %v3785_v46 }
  0x44   : > { %3638 = vmatprep.subr.bf16.mxu0 %v3980_v5  ;;  %3604 = vmatprep.subr.bf16.mxu1 %v3980_v5 }
  0x47   : > { %3639 = vmatpush3.bf16.msra.mxu0 %v3786_v47  ;;  %v3791_v47 = vld [vmem:[%s4799_s24 + $0x58] sm:$0xff]  }
  0xe1   : > { %v714_v49 = vpop.f32.mrf.mxu1 }
  0xe2   : > { %v4314_v50 = vpop.f32.mrf.mxu0  ;;  %v760_v51 = vadd.f32 %v4312_v48, %v714_v49 }
  0xe3   : > { %v4317_v52 = vpop.f32.mrf.mxu1 }
  0xe4   : > { %v4319_v53 = vpop.f32.mrf.mxu0  ;;  %v776_v56 = vmul.f32 0.01, %v760_v51  ;;  %vm768_vm3 = vcmp.gt.f32.partialorder %v760_v51, 0.0 }
  0xe5   : > { %v718_v54 = vpop.f32.mrf.mxu1 }
  0xe6   : > { %v4321_v55 = vpop.f32.mrf.mxu0  ;;  %v761_v57 = vadd.f32 %v4312_v48, %v718_v54  ;;  %v784_v2 = vsel %vm768_vm3, %v760_v51, %v776_v56  ;;  %v3792_v51 = vld [vmem:[%s4799_s24 + $0x50] sm:$0xff]  }
  0xe7   : > { %v4324_v58 = vpop.f32.mrf.mxu1 }
  0xe8   : > { %v4326_v59 = vpop.f32.mrf.mxu0  ;;  %vm769_vm4 = vcmp.gt.f32.partialorder %v761_v57, 0.0  ;;  %v777_v61 = vmul.f32 0.01, %v761_v57 }
  0xe9   : > { %v724_v62 = vpop.f32.mrf.mxu1 }
  0xea   : > { %v1218_v63 = vpop.f32.mrf.mxu0  ;;  %v762_v0 = vadd.f32 %v4312_v48, %v724_v62  ;;  %v785_v3 = vsel %vm769_vm4, %v761_v57, %v777_v61  ;;  %v3793_v57 = vld [vmem:[%s4799_s24 + $0x48] sm:$0xff]   ;;  %v3794_v62 = vld [vmem:[%s4799_s24 + $0x40] sm:$0xff]  }
  0xeb   : > { %v1235_v1 = vadd.f32 %v3218_v60, %v1218_v63  ;;  %v4332_v4 = vpop.f32.mrf.mxu1  ;;  %v792_v7 = vpack.c.bf16 %v785_v3, %v784_v2  ;;  %v3170_v3 = vld [vmem:[%s4767_s4] ss:$0 sm:$0xff] }
  0xec   : > { %v4334_v6 = vpop.f32.mrf.mxu0  ;;  %v778_v11 = vmul.f32 0.01, %v762_v0  ;;  %vm770_vm6 = vcmp.gt.f32.partialorder %v762_v0, 0.0 }
  0xed   : > { %vm1237_vm5 = vcmp.gt.f32.partialorder %v1235_v1, 0.0  ;;  %v1239_v8 = vmul.f32 0.01, %v1235_v1  ;;  %v728_v9 = vpop.f32.mrf.mxu1  ;;  %3596 = vmatprep.mubr.bf16.mxu1 %v792_v7 }
  0xee   : > { %v1222_v10 = vpop.f32.mrf.mxu0  ;;  %v763_v12 = vadd.f32 %v4312_v48, %v728_v9  ;;  %v786_v19 = vsel %vm770_vm6, %v762_v0, %v778_v11 }
  0xef   : > { %v1236_v13 = vadd.f32 %v3218_v60, %v1222_v10  ;;  %v1241_v14 = vsel %vm1237_vm5, %v1235_v1, %v1239_v8  ;;  %v4337_v15 = vpop.f32.mrf.mxu1  ;;  %v3244_v8 = vld [vmem:[%s4767_s4 + $0x2] ss:$0 sm:$0xff] }
  0xf0   : > { %vm771_vm7 = vcmp.gt.f32.partialorder %v763_v12, 0.0  ;;  %v779_v16 = vmul.f32 0.01, %v763_v12  ;;  %v1224_v1 = vpop.f32.mrf.mxu0 }
  0xf1   : > { %vm1238_vm8 = vcmp.gt.f32.partialorder %v1236_v13, 0.0  ;;  %v1240_v17 = vmul.f32 0.01, %v1236_v13  ;;  %v734_v18 = vpop.f32.mrf.mxu1 }
  0xf2   : > { %v787_v20 = vsel %vm771_vm7, %v763_v12, %v779_v16  ;;  %v764_v22 = vadd.f32 %v4312_v48, %v734_v18 }
  0xf3   : > { %v1242_v21 = vsel %vm1238_vm8, %v1236_v13, %v1240_v17  ;;  %v793_v24 = vpack.c.bf16 %v787_v20, %v786_v19  ;;  %v4343_v26 = vpop.f32.mrf.mxu1 }
  0xf4   : > { %v1243_v25 = vpack.c.bf16 %v1242_v21, %v1241_v14  ;;  %v780_v27 = vmul.f32 0.01, %v764_v22  ;;  %vm772_vm9 = vcmp.gt.f32.partialorder %v764_v22, 0.0 }
  0xf5   : > { %v738_v28 = vpop.f32.mrf.mxu1  ;;  %3597 = vmatmul.mubr.bf16.vlgmr.msra.gmra.mxu1 %v793_v24 }
  0xf6   : > { %3641 = vmatmul.mubr.bf16.vlgmr.msra.gmra.mxu0 %v1243_v25  ;;  %v765_v29 = vadd.f32 %v4312_v48, %v738_v28  ;;  %3605 = vmatpush3.bf16.msra.mxu1 %v3787_v23  ;;  %v788_v33 = vsel %vm772_vm9, %v764_v22, %v780_v27 }
  0xf7   : > { %v4349_v31 = vpop.f32.mrf.mxu1  ;;  %3606 = vmatprep.subr.bf16.mxu1 %v3980_v5 }
  0xf8   : > { %vm773_vm10 = vcmp.gt.f32.partialorder %v765_v29, 0.0  ;;  %v781_v32 = vmul.f32 0.01, %v765_v29 }
  0xf9   : > { %v744_v34 = vpop.f32.mrf.mxu1 }
  0xfa   : > { %v766_v35 = vadd.f32 %v4312_v48, %v744_v34  ;;  %3607 = vmatpush3.bf16.msra.mxu1 %v3788_v30  ;;  %v789_v37 = vsel %vm773_vm10, %v765_v29, %v781_v32 }
  0xfb   : > { %v4356_v38 = vpop.f32.mrf.mxu1  ;;  %3608 = vmatprep.subr.bf16.mxu1 %v3980_v5  ;;  %v794_v39 = vpack.c.bf16 %v789_v37, %v788_v33  ;;  %v3207_v37 = vld [vmem:[%s4767_s4 + $0x1] ss:$0 sm:$0xff] }
  0xfc   : > { %v782_v40 = vmul.f32 0.01, %v766_v35  ;;  %vm774_vm11 = vcmp.gt.f32.partialorder %v766_v35, 0.0 }
  0xfd   : > { %v748_v41 = vpop.f32.mrf.mxu1  ;;  %3600 = vmatprep.mubr.bf16.mxu1 %v794_v39 }
  0xfe   : > { %v767_v42 = vadd.f32 %v4312_v48, %v748_v41  ;;  %3609 = vmatpush3.bf16.msra.mxu1 %v3789_v36  ;;  %v790_v45 = vsel %vm774_vm11, %v766_v35, %v782_v40  ;;  %v3181_v48 = vld [vmem:[%s4800_s25 + $0x1] ss:$0 sm:$0xff] }
  0xff   : > { %3610 = vmatprep.subr.bf16.mxu1 %v3980_v5  ;;  %v1028_v54 = vadd.f32 %v3181_v48, %v4314_v50  ;;  %v1029_v56 = vadd.f32 %v3181_v48, %v4321_v55  ;;  %v750_v0 = vpop.f32.mrf.mxu1 }
 0x100   : > { %vm775_vm12 = vcmp.gt.f32.partialorder %v767_v42, 0.0  ;;  %v783_v44 = vmul.f32 0.01, %v767_v42 }
 0x101   : > { %v1032_v60 = vmul.f32 0.01, %v1028_v54  ;;  %v1033_v61 = vmul.f32 0.01, %v1029_v56  ;;  %vm1030_vm13 = vcmp.gt.f32.partialorder %v1028_v54, 0.0  ;;  %vm1031_vm14 = vcmp.gt.f32.partialorder %v1029_v56, 0.0 }
 0x102   : > { %3611 = vmatpush3.bf16.msra.mxu1 %v3790_v43  ;;  %v791_v46 = vsel %vm775_vm12, %v767_v42, %v783_v44 }
 0x103   : > { %3612 = vmatprep.subr.bf16.mxu1 %v3980_v5  ;;  %v795_v49 = vpack.c.bf16 %v791_v46, %v790_v45  ;;  %v1034_v50 = vsel %vm1030_vm13, %v1028_v54, %v1032_v60  ;;  %v1035_v55 = vsel %vm1031_vm14, %v1029_v56, %v1033_v61 }
 0x104   : > { %v1036_v63 = vpack.c.bf16 %v1035_v55, %v1034_v50 }
 0x105   : > { %3601 = vmatmul.mubr.bf16.gmra.mxu1 %v795_v49 }
 0x106   : > { %3613 = vmatpush3.bf16.msra.mxu1 %v3791_v47  ;;  %3620 = vmatprep.mubr.msk.bf16.mxu1 %vm3981_vm2, %v3980_v5 }
 0x107   : > { %3614 = vmatprep.subr.bf16.mxu1 %v3980_v5 }
 0x10a   : > { %3615 = vmatpush3.bf16.msra.mxu1 %v3792_v51 }
 0x10b   : > { %3616 = vmatprep.subr.bf16.mxu1 %v3980_v5 }
 0x10e   : > { %3617 = vmatpush3.bf16.msra.mxu1 %v3793_v57 }
 0x10f   : > { %3618 = vmatprep.subr.bf16.mxu1 %v3980_v5 }
 0x112   : > { %3619 = vmatpush3.bf16.msra.mxu1 %v3794_v62 }
 0x115   : > { %3621 = vmatmul.mubr.bf16.vlgmr.msra.gmra.mxu1 %v1036_v63 }
 0x1b5   : > { %v3598_v2 = vpop.f32.mrf.mxu1 }
 0x1b6   : > { %v1343_v7 = vpop.f32.mrf.mxu0  ;;  %v903_v9 = vadd.f32 %v3598_v2, %v4332_v4 }
 0x1b7   : > { %v1344_v5 = vadd.f32 %v1343_v7, %v4334_v6  ;;  %v894_v10 = vpop.f32.mrf.mxu1 }
 0x1b8   : > { %v3642_v11 = vpop.f32.mrf.mxu0  ;;  %v934_v12 = vadd.f32 %v3170_v3, %v903_v9  ;;  %v895_v14 = vadd.f32 %v894_v10, %v4317_v52 }
 0x1b9   : > { %v1358_v13 = vadd.f32 %v3244_v8, %v1344_v5  ;;  %v3599_v16 = vpop.f32.mrf.mxu1 }
 0x1ba   : > { %v1346_v17 = vpop.f32.mrf.mxu0  ;;  %942 = vst [vmem:[#allocation2 + $0x58] sm:$0xff] %v934_v12  ;;  %v932_v18 = vadd.f32 %v3170_v3, %v895_v14  ;;  %v906_v19 = vadd.f32 %v3599_v16, %v4337_v15 }
 0x1bb   : > { %1360 = vst [vmem:[#allocation2 + $0x10] sm:$0xff] %v1358_v13  ;;  %v1347_v20 = vadd.f32 %v1346_v17, %v1224_v1  ;;  %v897_v21 = vpop.f32.mrf.mxu1 }
 0x1bc   : > { %v3643_v22 = vpop.f32.mrf.mxu0  ;;  %940 = vst [vmem:[#allocation2 + $0x30] sm:$0xff] %v932_v18  ;;  %v935_v4 = vadd.f32 %v3170_v3, %v906_v19  ;;  %v898_v6 = vadd.f32 %v897_v21, %v4324_v58 }
 0x1bd   : > { %v1359_v23 = vadd.f32 %v3244_v8, %v1347_v20 }
 0x1be   : > { %943 = vst [vmem:[#allocation2 + $0x18] sm:$0xff] %v935_v4  ;;  %v933_v24 = vadd.f32 %v3170_v3, %v898_v6 }
 0x1bf   : > { %1361 = vst [vmem:[#allocation2 + $0x40] sm:$0xff] %v1359_v23 }
 0x1c0   : > { %941 = vst [vmem:[#allocation2] sm:$0xff] %v933_v24 }
 0x1c5   : > { %v3602_v52 = vpop.f32.mrf.mxu1 }
 0x1c6   : > { %v919_v25 = vadd.f32 %v3602_v52, %v4356_v38 }
 0x1c7   : > { %v910_v27 = vpop.f32.mrf.mxu1 }
 0x1c8   : > { %v938_v28 = vadd.f32 %v3170_v3, %v919_v25  ;;  %v911_v29 = vadd.f32 %v910_v27, %v4343_v26 }
 0x1c9   : > { %v3603_v15 = vpop.f32.mrf.mxu1 }
 0x1ca   : > { %946 = vst [vmem:[#allocation2 + $0x8] sm:$0xff] %v938_v28  ;;  %v936_v30 = vadd.f32 %v3170_v3, %v911_v29  ;;  %v922_v32 = vadd.f32 %v3603_v15, %v750_v0 }
 0x1cb   : > { %v913_v33 = vpop.f32.mrf.mxu1 }
 0x1cc   : > { %944 = vst [vmem:[#allocation2 + $0x50] sm:$0xff] %v936_v30  ;;  %v939_v34 = vadd.f32 %v3170_v3, %v922_v32  ;;  %v914_v58 = vadd.f32 %v913_v33, %v4349_v31 }
 0x1ce   : > { %947 = vst [vmem:[#allocation2 + $0x38] sm:$0xff] %v939_v34  ;;  %v937_v35 = vadd.f32 %v3170_v3, %v914_v58 }
 0x1d0   : > { %945 = vst [vmem:[#allocation2 + $0x20] sm:$0xff] %v937_v35 }
 0x1d5   : > { %v1136_v36 = vpop.f32.mrf.mxu1 }
 0x1d6   : > { %v1137_v38 = vadd.f32 %v1136_v36, %v4319_v53 }
 0x1d7   : > { %v3622_v26 = vpop.f32.mrf.mxu1 }
 0x1d8   : > { %v1151_v39 = vadd.f32 %v3207_v37, %v1137_v38 }
 0x1d9   : > { %v1139_v40 = vpop.f32.mrf.mxu1 }
 0x1da   : > { %1153 = vst [vmem:[#allocation2 + $0x28] sm:$0xff] %v1151_v39  ;;  %v1140_v41 = vadd.f32 %v1139_v40, %v4326_v59 }
 0x1db   : > { %v3623_v42 = vpop.f32.mrf.mxu1 }
 0x1dc   : > { %v1152_v43 = vadd.f32 %v3207_v37, %v1140_v41 }
 0x1de   : > { %1154 = vst [vmem:[#allocation2 + $0x48] sm:$0xff] %v1152_v43 }
 0x1df PF: > { %v4406_v31 = vld [vmem:[#allocation2 + $0x10] sm:$0xff]  ;;  %v1394_v44 = vld [vmem:[#allocation2 + $0x40] sm:$0xff]  ;;  %v4415_v49 = vld [vmem:[#allocation2 + $0x8] sm:$0xff]  ;;  %vm1455_vm15 = vcmask 785408   ;;  %p3379_p5 = scmp.ne.s32.totalorder %s4092_s30, 1 }
 0x1e0   : > { %v1424_v46 = vpack.c.bf16 %v1394_v44, %v4406_v31  ;;  %v4417_v59 = vld [vmem:[#allocation2 + $0x38] sm:$0xff]  ;;  %v3795_v48 = vld [vmem:[%s4768_s5] sm:$0xff]   ;;  %v4424_v54 = vld [vmem:[#allocation2 + $0x50] sm:$0xff]  ;;  %v3982_v44 = vmov 0.0   ;;  %s3984_s6 = smov (!%p3379_p5), 64  }
 0x1e1   : > { %v4408_v45 = vld [vmem:[#allocation2 + $0x28] sm:$0xff]  ;;  %v1422_v51 = vpack.c.bf16 %v4417_v59, %v4415_v49  ;;  %v4426_v56 = vld [vmem:[#allocation2 + $0x20] sm:$0xff]  ;;  %3656 = vmatprep.mubr.msk.bf16.mxu0 %vm1455_vm15, %v3795_v48  ;;  %v4429_v57 = vld [vmem:[#allocation2 + $0x58] sm:$0xff] }
 0x1e2   : > { %3644 = vmatprep.subr.bf16.mxu0 %v1424_v46  ;;  %v1421_v60 = vpack.c.bf16 %v4426_v56, %v4424_v54  ;;  %v4433_v61 = vld [vmem:[#allocation2 + $0x18] sm:$0xff]  ;;  %v4437_v55 = vld [vmem:[#allocation2 + $0x30] sm:$0xff]  ;;  %v4439_v63 = vld [vmem:[#allocation2] sm:$0xff] }
 0x1e3   : > { %3645 = vmatpush3.bf16.msra.mxu0 %v1424_v46  ;;  %v3801_v62 = vld [vmem:[%s4101_s23 + $0x78] sm:$0xff]   ;;  %v3803_v0 = vld [vmem:[%s4101_s23 + $0x70] sm:$0xff]   ;;  %v1420_v1 = vpack.c.bf16 %v4433_v61, %v4429_v57  ;;  %v3805_v3 = vld [vmem:[%s4101_s23 + $0x68] sm:$0xff]   ;;  %v1419_v7 = vpack.c.bf16 %v4439_v63, %v4437_v55 }
 0x1e4   : > { %v3802_v50 = vld [vmem:[%s4101_s23 + $0x38] sm:$0xff]   ;;  %3462 = vmatprep.subr.bf16.mxu1 %v3801_v62  ;;  %v3804_v2 = vld [vmem:[%s4101_s23 + $0x30] sm:$0xff]   ;;  %v3806_v8 = vld [vmem:[%s4101_s23 + $0x28] sm:$0xff]  }
 0x1e5   : > { %v4411_v47 = vld [vmem:[#allocation2 + $0x48] sm:$0xff]  ;;  %3463 = vmatpush3.bf16.msra.mxu1 %v3802_v50  ;;  %v3807_v9 = vld [vmem:[%s4101_s23 + $0x60] sm:$0xff]   ;;  %v3811_v11 = vld [vmem:[%s4101_s23 + $0xf8] sm:$0xff]  }
 0x1e6   : > { %v1423_v53 = vpack.c.bf16 %v4411_v47, %v4408_v45  ;;  %3464 = vmatprep.subr.bf16.mxu1 %v3803_v0  ;;  %v3808_v5 = vld [vmem:[%s4101_s23 + $0x20] sm:$0xff]   ;;  %v3796_v10 = vld [vmem:[%s4768_s5 + $0x8] sm:$0xff]   ;;  %v3797_v12 = vld [vmem:[%s4768_s5 + $0x10] sm:$0xff]  }
 0x1e7   : > { %v3809_v13 = vld [vmem:[%s4101_s23 + $0x58] sm:$0xff]   ;;  %v3813_v17 = vld [vmem:[%s4101_s23 + $0x50] sm:$0xff]   ;;  %v3799_v22 = vld [vmem:[%s4768_s5 + $0x20] sm:$0xff]  }
 0x1e8   : > { %3646 = vmatprep.subr.bf16.mxu0 %v1423_v53  ;;  %v3810_v14 = vld [vmem:[%s4101_s23 + $0x18] sm:$0xff]   ;;  %v3815_v18 = vld [vmem:[%s4101_s23 + $0xf0] sm:$0xff]   ;;  %v3800_v4 = vld [vmem:[%s4768_s5 + $0x28] sm:$0xff]  }
 0x1e9   : > { %3647 = vmatpush3.bf16.msra.mxu0 %v1423_v53  ;;  %3465 = vmatpush3.bf16.msra.mxu1 %v3804_v2  ;;  %v3812_v16 = vld [vmem:[%s4101_s23 + $0xb8] sm:$0xff]   ;;  %v3816_v19 = vld [vmem:[%s4101_s23 + $0xb0] sm:$0xff]   ;;  %v3817_v23 = vld [vmem:[%s4101_s23 + $0x48] sm:$0xff]  }
 0x1ea   : > { %3648 = vmatprep.subr.bf16.mxu0 %v1422_v51  ;;  %3466 = vmatprep.subr.bf16.mxu1 %v3805_v3  ;;  %v3814_v20 = vld [vmem:[%s4101_s23 + $0x10] sm:$0xff]   ;;  %v3798_v21 = vld [vmem:[%s4768_s5 + $0x18] sm:$0xff]   ;;  %v3818_v6 = vld [vmem:[%s4101_s23 + $0x8] sm:$0xff]  }
 0x1eb   : > { %v3819_v24 = vld [vmem:[%s4101_s23 + $0xe8] sm:$0xff]   ;;  %v3821_v25 = vld [vmem:[%s4101_s23 + $0x40] sm:$0xff]   ;;  %v3825_v33 = vld [vmem:[%s4101_s23 + $0x178] sm:$0xff]  }
 0x1ec   : > { %v3820_v52 = vld [vmem:[%s4101_s23 + $0xa8] sm:$0xff]   ;;  %v3822_v27 = vld [vmem:[%s4101_s23] sm:$0xff]   ;;  %v3827_v34 = vld [vmem:[%s4101_s23 + $0xd8] sm:$0xff]  }
 0x1ed   : > { %3649 = vmatpush3.bf16.msra.mxu0 %v1422_v51  ;;  %3467 = vmatpush3.bf16.msra.mxu1 %v3806_v8  ;;  %v3823_v28 = vld [vmem:[%s4101_s23 + $0xe0] sm:$0xff]   ;;  %v1395_v15 = vld [vmem:[#allocation3 + $0x48] sm:$0xff]  ;;  %v3828_v58 = vld [vmem:[%s4101_s23 + $0x98] sm:$0xff]  }
 0x1ee   : > { %3650 = vmatprep.subr.bf16.mxu0 %v1421_v60  ;;  %3468 = vmatprep.subr.bf16.mxu1 %v3807_v9  ;;  %v3824_v29 = vld [vmem:[%s4101_s23 + $0xa0] sm:$0xff]   ;;  %v3831_v35 = vld [vmem:[%s4101_s23 + $0xd0] sm:$0xff]   ;;  %v3835_v37 = vld [vmem:[%s4101_s23 + $0xc8] sm:$0xff]  }
 0x1ef   : > { %v1396_v30 = vld [vmem:[#allocation3] sm:$0xff]  ;;  %v3832_v36 = vld [vmem:[%s4101_s23 + $0x90] sm:$0xff]   ;;  %v3836_v38 = vld [vmem:[%s4101_s23 + $0x88] sm:$0xff]  }
 0x1f0   : > { %v1556_v32 = vpack.c.bf16 %v1396_v30, %v1395_v15  ;;  %v3839_v26 = vld [vmem:[%s4101_s23 + $0xc0] sm:$0xff]   ;;  %v1403_v40 = vld [vmem:[#allocation3 + $0x38] sm:$0xff]  ;;  %v1404_v41 = vld [vmem:[#allocation3 + $0x28] sm:$0xff] }
 0x1f1   : > { %3651 = vmatpush3.bf16.msra.mxu0 %v1421_v60  ;;  %3469 = vmatpush3.bf16.msra.mxu1 %v3808_v5  ;;  %v3840_v39 = vld [vmem:[%s4101_s23 + $0x80] sm:$0xff]   ;;  %v1811_v42 = vpack.c.bf16 %v1404_v41, %v1403_v40  ;;  %v4496_v43 = vld [vmem:[#allocation3 + $0x10] sm:$0xff]  ;;  %v3826_v50 = vld [vmem:[%s4101_s23 + $0x138] sm:$0xff]  }
 0x1f2   : > { %3652 = vmatprep.subr.bf16.mxu0 %v1420_v1  ;;  %3470 = vmatprep.subr.bf16.mxu1 %v3809_v13  ;;  %2208 = vst [vmem:[#allocation3 + $0x10] sm:$0xff] %v3982_v44  ;;  %v1397_v48 = vld [vmem:[#allocation3 + $0x50] sm:$0xff]  ;;  %v3833_v9 = vld [vmem:[%s4101_s23 + $0x168] sm:$0xff]   ;;  %v1405_v30 = vld [vmem:[#allocation3 + $0x58] sm:$0xff] }
 0x1f3   : > { %1730 = vmatprep.mubr.bf16.mxu1 %v1556_v32  ;;  %v1398_v51 = vld [vmem:[#allocation3 + $0x30] sm:$0xff]  ;;  %v1399_v5 = vld [vmem:[#allocation3 + $0x8] sm:$0xff] }
 0x1f4   : > { %v1558_v0 = vpack.c.bf16 %v1398_v51, %v1397_v48  ;;  %v3829_v2 = vld [vmem:[%s4101_s23 + $0x170] sm:$0xff]   ;;  %v3834_v13 = vld [vmem:[%s4101_s23 + $0x128] sm:$0xff]  }
 0x1f5   : > { %3653 = vmatpush3.bf16.msra.mxu0 %v1420_v1  ;;  %3471 = vmatpush3.bf16.msra.mxu1 %v3810_v14  ;;  %v3830_v8 = vld [vmem:[%s4101_s23 + $0x130] sm:$0xff]   ;;  %v3845_v15 = vld [vmem:[%s4101_s23 + $0x148] sm:$0xff]  }
 0x1f6   : > { %3654 = vmatprep.subr.bf16.mxu0 %v1419_v7  ;;  %3472 = vmatprep.subr.bf16.mxu1 %v3813_v17  ;;  %v3837_v17 = vld [vmem:[%s4101_s23 + $0x160] sm:$0xff]   ;;  %v3846_v32 = vld [vmem:[%s4101_s23 + $0x108] sm:$0xff]  }
 0x1f9   : > { %3655 = vmatpush3.bf16.msra.mxu0 %v1419_v7  ;;  %3473 = vmatpush3.bf16.msra.mxu1 %v3814_v20  ;;  %v3838_v20 = vld [vmem:[%s4101_s23 + $0x120] sm:$0xff]  }
 0x1fa   : > { %3502 = vmatprep.subr.bf16.mxu0 %v3811_v11  ;;  %3474 = vmatprep.subr.bf16.mxu1 %v3817_v23 }
 0x1fc   : > { %3657 = vmatmul.mubr.msk.bf16.vlgmr.msra.gmra.mxu0 %vm1455_vm15, %v3796_v10  ;;  %v1400_v10 = vld [vmem:[#allocation3 + $0x20] sm:$0xff] }
 0x1fd   : > { %3660 = vmatprep.mubr.msk.bf16.mxu0 %vm1455_vm15, %v3797_v12  ;;  %3503 = vmatpush3.bf16.msra.mxu0 %v3812_v16  ;;  %v1560_v14 = vpack.c.bf16 %v1400_v10, %v1399_v5 }
 0x1fe   : > { %3504 = vmatprep.subr.bf16.mxu0 %v3815_v18  ;;  %3475 = vmatpush3.bf16.msra.mxu1 %v3818_v6 }
 0x1ff   : > { %3476 = vmatprep.subr.bf16.mxu1 %v3821_v25 }
 0x201   : > { %3505 = vmatpush3.bf16.msra.mxu0 %v3816_v19 }
 0x202   : > { %3506 = vmatprep.subr.bf16.mxu0 %v3819_v24  ;;  %3477 = vmatpush3.bf16.msra.mxu1 %v3822_v27  ;;  %v3842_v24 = vld [vmem:[%s4101_s23 + $0x118] sm:$0xff]  }
 0x203   : > { %3524 = vmatprep.subr.bf16.mxu1 %v3825_v33  ;;  %v2009_v33 = vpack.c.bf16 %v4496_v43, %v1405_v30 }
 0x204   : > { %3661 = vmatmul.mubr.msk.bf16.gmra.mxu0 %vm1455_vm15, %v3798_v21  ;;  %v3841_v21 = vld [vmem:[%s4101_s23 + $0x158] sm:$0xff]  }
 0x205   : > { %3664 = vmatprep.mubr.msk.bf16.mxu0 %vm1455_vm15, %v3799_v22  ;;  %3507 = vmatpush3.bf16.msra.mxu0 %v3820_v52  ;;  %v1401_v22 = vld [vmem:[#allocation3 + $0x18] sm:$0xff] }
 0x206   : > { %3508 = vmatprep.subr.bf16.mxu0 %v3823_v28  ;;  %v3843_v28 = vld [vmem:[%s4101_s23 + $0x150] sm:$0xff]  }
 0x209   : > { %3509 = vmatpush3.bf16.msra.mxu0 %v3824_v29  ;;  %v3844_v29 = vld [vmem:[%s4101_s23 + $0x110] sm:$0xff]  }
 0x20a   : > { %3510 = vmatprep.subr.bf16.mxu0 %v3827_v34 }
 0x20c   : > { %3665 = vmatmul.mubr.msk.bf16.gmra.mxu0 %vm1455_vm15, %v3800_v4  ;;  %v1402_v4 = vld [vmem:[#allocation3 + $0x40] sm:$0xff] }
 0x20d   : > { %3511 = vmatpush3.bf16.msra.mxu0 %v3828_v58  ;;  %1981 = vmatprep.mubr.bf16.mxu0 %v1811_v42  ;;  %v1562_v52 = vpack.c.bf16 %v1402_v4, %v1401_v22  ;;  %v3847_v58 = vld [vmem:[%s4101_s23 + $0x140] sm:$0xff]  }
 0x20e   : > { %3512 = vmatprep.subr.bf16.mxu0 %v3831_v35  ;;  %v3848_v35 = vld [vmem:[%s4101_s23 + $0x100] sm:$0xff]  }
 0x211   : > { %3513 = vmatpush3.bf16.msra.mxu0 %v3832_v36 }
 0x212   : > { %3514 = vmatprep.subr.bf16.mxu0 %v3835_v37 }
 0x215   : > { %3515 = vmatpush3.bf16.msra.mxu0 %v3836_v38  ;;  %v4515_v38 = vld [vmem:[%s4106_s3] ss:$0 sm:$0xff] }
 0x216   : > { %3516 = vmatprep.subr.bf16.mxu0 %v3839_v26 }
 0x219   : > { %3517 = vmatpush3.bf16.msra.mxu0 %v3840_v39 }
 0x2bc   : > { %v3658_v46 = vpop.f32.mrf.mxu0 }
 0x2be   : > { %v1508_v53 = vpop.f32.mrf.mxu0 }
 0x2c0   : > { %v3659_v60 = vpop.f32.mrf.mxu0 }
 0x2c1   : > { %v1557_v16 = vpack.c.bf16 %v3659_v60, %v3658_v46 }
 0x2c2   : > { %v1511_v62 = vpop.f32.mrf.mxu0 }
 0x2c3   : > { %v1555_v1 = vpack.c.bf16 %v1511_v62, %v1508_v53 }
 0x2c4   : > { %v3662_v3 = vpop.f32.mrf.mxu0 }
 0x2c5   : > { %1731 = vmatmul.mubr.bf16.vlgmr.msra.gmra.mxu1 %v1555_v1 }
 0x2c6   : > { %3525 = vmatpush3.bf16.msra.mxu1 %v3826_v50  ;;  %v1524_v7 = vpop.f32.mrf.mxu0  ;;  %1738 = vmatprep.mubr.bf16.mxu1 %v1558_v0 }
 0x2c7   : > { %3526 = vmatprep.subr.bf16.mxu1 %v3829_v2 }
 0x2c8   : > { %v3663_v11 = vpop.f32.mrf.mxu0 }
 0x2c9   : > { %v1561_v34 = vpack.c.bf16 %v3663_v11, %v3662_v3  ;;  %v4522_v3 = vld [vmem:[%s4111_s28] ss:$0 sm:$0xff] }
 0x2ca   : > { %3527 = vmatpush3.bf16.msra.mxu1 %v3830_v8  ;;  %v1527_v12 = vpop.f32.mrf.mxu0  ;;  %v3308_v8 = vld [vmem:[%s4106_s3 + $0x1] ss:$0 sm:$0xff] }
 0x2cb   : > { %3528 = vmatprep.subr.bf16.mxu1 %v3833_v9  ;;  %v1559_v25 = vpack.c.bf16 %v1527_v12, %v1524_v7 }
 0x2cc   : > { %v3666_v18 = vpop.f32.mrf.mxu0 }
 0x2cd   : > { %1739 = vmatmul.mubr.bf16.gmra.mxu1 %v1557_v16 }
 0x2ce   : > { %3529 = vmatpush3.bf16.msra.mxu1 %v3834_v13  ;;  %v1540_v19 = vpop.f32.mrf.mxu0  ;;  %1746 = vmatprep.mubr.bf16.mxu1 %v1560_v14 }
 0x2cf   : > { %3530 = vmatprep.subr.bf16.mxu1 %v3837_v17 }
 0x2d0   : > { %v3667_v23 = vpop.f32.mrf.mxu0 }
 0x2d1   : > { %v2008_v36 = vpack.c.bf16 %v3667_v23, %v3666_v18 }
 0x2d2   : > { %3531 = vmatpush3.bf16.msra.mxu1 %v3838_v20  ;;  %v1543_v6 = vpop.f32.mrf.mxu0 }
 0x2d3   : > { %v1810_v27 = vpack.c.bf16 %v1543_v6, %v1540_v19  ;;  %3532 = vmatprep.subr.bf16.mxu1 %v3841_v21 }
 0x2d5   : > { %1747 = vmatmul.mubr.bf16.gmra.mxu1 %v1559_v25  ;;  %1982 = vmatmul.mubr.bf16.vlgmr.msra.gmra.mxu0 %v1810_v27 }
 0x2d6   : > { %3533 = vmatpush3.bf16.msra.mxu1 %v3842_v24  ;;  %1754 = vmatprep.mubr.bf16.mxu1 %v1562_v52 }
 0x2d7   : > { %3534 = vmatprep.subr.bf16.mxu1 %v3843_v28 }
 0x2da   : > { %3535 = vmatpush3.bf16.msra.mxu1 %v3844_v29 }
 0x2db   : > { %3536 = vmatprep.subr.bf16.mxu1 %v3845_v15 }
 0x2dd   : > { %1755 = vmatmul.mubr.bf16.gmra.mxu1 %v1561_v34 }
 0x2de   : > { %3537 = vmatpush3.bf16.msra.mxu1 %v3846_v32  ;;  %2179 = vmatprep.mubr.bf16.mxu1 %v2009_v33 }
 0x2df   : > { %3538 = vmatprep.subr.bf16.mxu1 %v3847_v58 }
 0x2e2   : > { %3539 = vmatpush3.bf16.msra.mxu1 %v3848_v35 }
 0x2e5   : > { %2180 = vmatmul.mubr.bf16.vlgmr.msra.gmra.mxu1 %v2008_v36 }
 0x385   : > { %v3478_v37 = vpop.f32.mrf.mxu1 }
 0x387   : > { %v3479_v26 = vpop.f32.mrf.mxu1 }
 0x388   : > { %v3480_v39 = vadd.f32 %v3479_v26, %v3478_v37  ;;  %v3360_v37 = vld [vmem:[%s4106_s3 + $0x2] ss:$0 sm:$0xff]  ;;  %s3985_s3 = smov (!%p3379_p5), 96  }
 0x389   : > { %v3481_v40 = vpop.f32.mrf.mxu1 }
 0x38a   : > { %v1733_v41 = vadd.f32 %v3480_v39, %v4515_v38 }
 0x38b   : > { %v3482_v42 = vpop.f32.mrf.mxu1 }
 0x38c   : > { %3849 = vtanh.f32 %v1733_v41  ;;  %v3483_v43 = vadd.f32 %v3482_v42, %v3481_v40  ;;  %v3326_v40 = vld [vmem:[%s4111_s28 + $0x1] ss:$0 sm:$0xff] }
 0x38d   : > { %v3484_v44 = vpop.f32.mrf.mxu1 }
 0x38e   : > { %v1736_v46 = vadd.f32 %v3483_v43, %v4515_v38 }
 0x38f   : > { %v3485_v53 = vpop.f32.mrf.mxu1 }
 0x390   : > { %3851 = vtanh.f32 %v1736_v46  ;;  %v3486_v48 = vadd.f32 %v3485_v53, %v3484_v44 }
 0x391   : > { %v3487_v51 = vpop.f32.mrf.mxu1 }
 0x392   : > { %v1741_v60 = vadd.f32 %v3486_v48, %v4515_v38 }
 0x393   : > { %v3488_v62 = vpop.f32.mrf.mxu1 }
 0x394   : > { %3853 = vtanh.f32 %v1741_v60  ;;  %v3489_v50 = vadd.f32 %v3488_v62, %v3487_v51 }
 0x395   : > { %v3490_v0 = vpop.f32.mrf.mxu1  ;;  %v3518_v1 = vpop.f32.mrf.mxu0 }
 0x396   : > { %v1744_v2 = vadd.f32 %v3489_v50, %v4515_v38 }
 0x397   : > { %v3491_v7 = vpop.f32.mrf.mxu1  ;;  %v3519_v9 = vpop.f32.mrf.mxu0 }
 0x398   : > { %3855 = vtanh.f32 %v1744_v2  ;;  %v3492_v5 = vadd.f32 %v3491_v7, %v3490_v0  ;;  %v3520_v10 = vadd.f32 %v3519_v9, %v3518_v1 }
 0x399   : > { %v3850_v11 = vpop.eup %3849  ;;  %v3493_v12 = vpop.f32.mrf.mxu1 }
 0x39a   : > { %v3521_v13 = vpop.f32.mrf.mxu0  ;;  %v1778_v14 = vmul.f32 %v3850_v11, %v4522_v3  ;;  %v1749_v16 = vadd.f32 %v3492_v5, %v4515_v38  ;;  %v1984_v17 = vadd.f32 %v3520_v10, %v3308_v8  ;;  %v3378_v10 = vld [vmem:[%s4111_s28 + $0x2] ss:$0 sm:$0xff]  ;;  %s3983_s28 = smov (!%p3379_p5), 32  }
 0x39b   : > { %v3494_v18 = vpop.f32.mrf.mxu1 }
 0x39c   : > { %v3522_v19 = vpop.f32.mrf.mxu0  ;;  %1786 = vst [vmem:[#allocation3 + $0x48] sm:$0xff] %v1778_v14  ;;  %v1794_v20 = vadd.f32 %v1778_v14, %v4437_v55  ;;  %3857 = vtanh.f32 %v1749_v16  ;;  %v3495_v21 = vadd.f32 %v3494_v18, %v3493_v12 }
 0x39d   : > { %v3523_v22 = vadd.f32 %v3522_v19, %v3521_v13  ;;  %v3852_v4 = vpop.eup %3851  ;;  %3859 = vtanh.f32 %v1984_v17  ;;  %v3496_v23 = vpop.f32.mrf.mxu1 }
 0x39e   : > { %1802 = vst [vmem:[#allocation2 + $0x30] sm:$0xff] %v1794_v20  ;;  %v1779_v6 = vmul.f32 %v3852_v4, %v4522_v3  ;;  %v1752_v24 = vadd.f32 %v3495_v21, %v4515_v38 }
 0x39f   : > { %v1987_v52 = vadd.f32 %v3523_v22, %v3308_v8  ;;  %v3497_v25 = vpop.f32.mrf.mxu1 }
 0x3a0   : > { %1787 = vst [vmem:[#allocation3] sm:$0xff] %v1779_v6  ;;  %v1795_v27 = vadd.f32 %v1779_v6, %v4439_v63  ;;  %3861 = vtanh.f32 %v1752_v24  ;;  %v3498_v28 = vadd.f32 %v3497_v25, %v3496_v23 }
 0x3a1   : > { %v3854_v29 = vpop.eup %3853  ;;  %3863 = vtanh.f32 %v1987_v52  ;;  %v3499_v55 = vpop.f32.mrf.mxu1 }
 0x3a2   : > { %1803 = vst [vmem:[#allocation2] sm:$0xff] %v1795_v27  ;;  %v1780_v15 = vmul.f32 %v3854_v29, %v4522_v3  ;;  %v1757_v30 = vadd.f32 %v3498_v28, %v4515_v38 }
 0x3a3   : > { %v3500_v32 = vpop.f32.mrf.mxu1 }
 0x3a4   : > { %1788 = vst [vmem:[#allocation3 + $0x50] sm:$0xff] %v1780_v15  ;;  %v1796_v33 = vadd.f32 %v1780_v15, %v4429_v57  ;;  %3865 = vtanh.f32 %v1757_v30  ;;  %v3501_v34 = vadd.f32 %v3500_v32, %v3499_v55 }
 0x3a5   : > { %v3856_v58 = vpop.eup %3855  ;;  %v3540_v63 = vpop.f32.mrf.mxu1 }
 0x3a6   : > { %1804 = vst [vmem:[#allocation2 + $0x58] sm:$0xff] %v1796_v33  ;;  %v1781_v35 = vmul.f32 %v3856_v58, %v4522_v3  ;;  %v1760_v36 = vadd.f32 %v3501_v34, %v4515_v38 }
 0x3a7   : > { %v3541_v26 = vpop.f32.mrf.mxu1 }
 0x3a8   : > { %1789 = vst [vmem:[#allocation3 + $0x30] sm:$0xff] %v1781_v35  ;;  %v1797_v39 = vadd.f32 %v1781_v35, %v4433_v61  ;;  %3867 = vtanh.f32 %v1760_v36  ;;  %v3542_v41 = vadd.f32 %v3541_v26, %v3540_v63 }
 0x3a9   : > { %v3858_v42 = vpop.eup %3857  ;;  %v3543_v43 = vpop.f32.mrf.mxu1 }
 0x3aa   : > { %v3860_v57 = vpop.eup %3859  ;;  %1805 = vst [vmem:[#allocation2 + $0x18] sm:$0xff] %v1797_v39  ;;  %v1782_v44 = vmul.f32 %v3858_v42, %v4522_v3  ;;  %v2182_v46 = vadd.f32 %v3542_v41, %v3360_v37 }
 0x3ab   : > { %v2000_v53 = vmul.f32 %v3860_v57, %v3326_v40  ;;  %v3544_v48 = vpop.f32.mrf.mxu1 }
 0x3ac   : > { %1790 = vst [vmem:[#allocation3 + $0x8] sm:$0xff] %v1782_v44  ;;  %v1798_v38 = vadd.f32 %v1782_v44, %v4424_v54  ;;  %3869 = vtanh.f32 %v2182_v46  ;;  %v2200_v54 = vlaneseq }
 0x3ad   : > { %v3862_v51 = vpop.eup %3861  ;;  %2002 = vst [vmem:[#allocation3 + $0x38] sm:$0xff] %v2000_v53  ;;  %v2004_v61 = vadd.f32 %v2000_v53, %v4408_v45 }
 0x3ae   : > { %v3864_v60 = vpop.eup %3863  ;;  %1806 = vst [vmem:[#allocation2 + $0x50] sm:$0xff] %v1798_v38  ;;  %v1783_v62 = vmul.f32 %v3862_v51, %v4522_v3  ;;  %v2201_v9 = vshrl.u32 %v2200_v54, 7 }
 0x3af   : > { %2006 = vst [vmem:[#allocation2 + $0x28] sm:$0xff] %v2004_v61  ;;  %v2001_v50 = vmul.f32 %v3864_v60, %v3326_v40 }
 0x3b0   : > { %1791 = vst [vmem:[#allocation3 + $0x20] sm:$0xff] %v1783_v62  ;;  %v1799_v0 = vadd.f32 %v1783_v62, %v4426_v56  ;;  %vm2203_vm0 = vcmp.lt.s32.totalorder %v2201_v9, 4 }
 0x3b1   : > { %v3866_v1 = vpop.eup %3865  ;;  %2003 = vst [vmem:[#allocation3 + $0x28] sm:$0xff] %v2001_v50  ;;  %v2005_v2 = vadd.f32 %v2001_v50, %v4411_v47 }
 0x3b2   : > { %1807 = vst [vmem:[#allocation2 + $0x20] sm:$0xff] %v1799_v0  ;;  %v1784_v7 = vmul.f32 %v3866_v1, %v4522_v3 }
 0x3b3   : > { %2007 = vst [vmem:[#allocation2 + $0x48] sm:$0xff] %v2005_v2 }
 0x3b4   : > { %1792 = vst [vmem:[#allocation3 + $0x18] sm:$0xff] %v1784_v7  ;;  %v1800_v45 = vadd.f32 %v1784_v7, %v4415_v49 }
 0x3b5   : > { %v3868_v8 = vpop.eup %3867 }
 0x3b6   : > { %1808 = vst [vmem:[#allocation2 + $0x8] sm:$0xff] %v1800_v45  ;;  %v1785_v5 = vmul.f32 %v3868_v8, %v4522_v3 }
 0x3b8   : > { %1793 = vst [vmem:[#allocation3 + $0x40] sm:$0xff] %v1785_v5  ;;  %v1801_v56 = vadd.f32 %v1785_v5, %v4417_v59 }
 0x3b9   : > { %v3870_v11 = vpop.eup %3869 }
 0x3ba   : > { %1809 = vst [vmem:[#allocation2 + $0x38] sm:$0xff] %v1801_v56  ;;  %v2198_v47 = vmul.f32 %v3870_v11, %v3378_v10 }
 0x3bb   : > { %2216 = sbr.rel (%p3379_p5) target bundleno = 2501 (0x9c5), region = 104 }
 0x3bc   : > { %v2205_v12 = vsel %vm2203_vm0, %v2198_v47, 0.0 }
 0x3bd   : > { %2207 = vst [vmem:[#allocation3 + $0x58] sm:$0xff] %v2205_v12  ;;  %v2209_v13 = vadd.f32 %v2205_v12, %v4406_v31 }
 0x3bf   : > { %2211 = vst [vmem:[#allocation2 + $0x10] sm:$0xff] %v2209_v13 }
 0x3c0   : > { %v2225_v49 = vld [vmem:[#allocation2 + $0x28] sm:$0xff]  ;;  %v2228_v19 = vld [vmem:[#allocation2 + $0x40] sm:$0xff]  ;;  %v3951_v21 = vld [vmem:[%s4772_s9 + $0x18] sm:$0xff]   ;;  %vm2287_vm1 = vcmask 261120   ;;  %vm2326_vm2 = vcmask 523264  }
 0x3c1   : > { %v2226_v14 = vld [vmem:[#allocation2 + $0x48] sm:$0xff]  ;;  %v2251_v18 = vmul.f32 0.0, %v2225_v49  ;;  %v2250_v20 = vmul.f32 0.0, %v2228_v19  ;;  %v3952_v22 = vld [vmem:[%s4772_s9 + $0x10] sm:$0xff]   ;;  %3668 = vmatprep.subr.bf16.mxu0 %v3951_v21  ;;  %v3954_v24 = vld [vmem:[%s4772_s9] sm:$0xff]  }
 0x3c2   : > { %v2252_v3 = vmul.f32 0.0, %v2226_v14  ;;  %v3871_v17 = vpack.i.bf16 %v2226_v14, %v2225_v49  ;;  %3669 = vmatpush3.bf16.msra.mxu0 %v3951_v21  ;;  %v3953_v23 = vld [vmem:[%s4772_s9 + $0x8] sm:$0xff]   ;;  %v3955_v40 = vld [vmem:[%s4774_s11 + $0x18] sm:$0xff]   ;;  %v3956_v41 = vld [vmem:[%s4774_s11 + $0x10] sm:$0xff]  }
 0x3c3   : > { %3670 = vmatprep.subr.bf16.mxu0 %v3952_v22  ;;  %3680 = vmatprep.subr.bf16.mxu1 %v3955_v40  ;;  %v2384_v42 = vld [vmem:[%s4773_s10 + $0x10] sm:$0xff]  ;;  %v3957_v43 = vld [vmem:[%s4774_s11 + $0x8] sm:$0xff]   ;;  %v2382_v44 = vld [vmem:[%s4773_s10] sm:$0xff] }
 0x3c4   : > { %3872 = vrot.lane.b32.xlu0 %v3871_v17, %s3983_s28  ;;  %v3876_v31 = vpack.i.bf16 %v2252_v3, %v2251_v18  ;;  %3681 = vmatpush3.bf16.msra.mxu1 %v3955_v40  ;;  %v2385_v48 = vld [vmem:[%s4773_s10 + $0x18] sm:$0xff]  ;;  %v3958_v51 = vld [vmem:[%s4774_s11] sm:$0xff]   ;;  %v2383_v62 = vld [vmem:[%s4773_s10 + $0x8] sm:$0xff] }
 0x3c5   : > { %3682 = vmatprep.subr.bf16.mxu1 %v3956_v41 }
 0x3c6   : > { %v2227_v16 = vld [vmem:[#allocation2 + $0x10] sm:$0xff]  ;;  %3671 = vmatpush3.bf16.msra.mxu0 %v3952_v22 }
 0x3c7   : > { %v2249_v59 = vmul.f32 0.0, %v2227_v16  ;;  %v3886_v6 = vpack.i.bf16 %v2228_v19, %v2227_v16  ;;  %3672 = vmatprep.subr.bf16.mxu0 %v3953_v23 }
 0x3c8   : > { %3877 = vrot.lane.b32.xlu0 %v3876_v31, %s3984_s6  ;;  %3683 = vmatpush3.bf16.msra.mxu1 %v3956_v41 }
 0x3c9   : > { %v3881_v4 = vpack.i.bf16 %v2250_v20, %v2249_v59  ;;  %3684 = vmatprep.subr.bf16.mxu1 %v3957_v43 }
 0x3ca   : > { %3673 = vmatpush3.bf16.msra.mxu0 %v3953_v23 }
 0x3cb   : > { %3882 = vrot.lane.b32.xlu1 %v3881_v4, %s3983_s28  ;;  %3674 = vmatprep.subr.bf16.mxu0 %v3954_v24 }
 0x3cc   : > { %3685 = vmatpush3.bf16.msra.mxu1 %v3957_v43 }
 0x3cd   : > { %3686 = vmatprep.subr.bf16.mxu1 %v3958_v51 }
 0x3ce   : > { %3675 = vmatpush3.bf16.msra.mxu0 %v3954_v24 }
 0x3cf   : > { %3887 = vrot.lane.b32.xlu1 %v3886_v6, %s3984_s6  ;;  %s4801_s6 = sld [smem:[#allocation10_spill]] }
 0x3d0   : > { %3687 = vmatpush3.bf16.msra.mxu1 %v3958_v51 }
 0x436   : > { %v3873_v52 = vpop.permute.xlu0 %3872 }
 0x437   : > { %v3875_v28 = vunpack.i.h.bf16 %v3873_v52  ;;  %v3874_v29 = vunpack.i.l.bf16 %v3873_v52 }
 0x43a   : > { %v3878_v27 = vpop.permute.xlu0 %3877 }
 0x43b   : > { %v3880_v55 = vunpack.i.h.bf16 %v3878_v27  ;;  %v3879_v15 = vunpack.i.l.bf16 %v3878_v27 }
 0x43d   : > { %v3883_v25 = vpop.permute.xlu1 %3882  ;;  %v2288_v33 = vsel %vm2287_vm1, %v3874_v29, %v3879_v15  ;;  %v2289_v34 = vsel %vm2287_vm1, %v3875_v28, %v3880_v55  ;;  %v2537_v28 = vld [vmem:[%s4775_s12 + $0x10] sm:$0xff]  ;;  %v2535_v29 = vld [vmem:[%s4775_s12] sm:$0xff]  ;;  %v2538_v15 = vld [vmem:[%s4775_s12 + $0x18] sm:$0xff] }
 0x43e   : > { %v3885_v30 = vunpack.i.h.bf16 %v3883_v25  ;;  %v3884_v58 = vunpack.i.l.bf16 %v3883_v25  ;;  %v2292_v36 = vpack.c.bf16 %v2289_v34, %v2288_v33  ;;  %v2536_v34 = vld [vmem:[%s4775_s12 + $0x8] sm:$0xff] }
 0x440   : > { %3676 = vmatprep.mubr.msk.bf16.mxu0 %vm2326_vm2, %v2292_v36 }
 0x441   : > { %v3888_v32 = vpop.permute.xlu1 %3887 }
 0x442   : > { %v3890_v63 = vunpack.i.h.bf16 %v3888_v32  ;;  %v3889_v35 = vunpack.i.l.bf16 %v3888_v32 }
 0x444   : > { %v2290_v37 = vsel %vm2287_vm1, %v3884_v58, %v3889_v35  ;;  %v2291_v26 = vsel %vm2287_vm1, %v3885_v30, %v3890_v63 }
 0x445   : > { %v2293_v39 = vpack.c.bf16 %v2291_v26, %v2290_v37  ;;  %v3959_v37 = vld [vmem:[%s4776_s13] sm:$0xff]  }
 0x447   : > { %3677 = vmatmul.mubr.msk.bf16.vlgmr.msra.gmra.mxu0 %vm2326_vm2, %v2293_v39 }
 0x448   : > { %3696 = vmatprep.mubr.msk.bf16.mxu0 %vm2287_vm1, %v3959_v37 }
 0x507   : > { %v3678_v57 = vpop.f32.mrf.mxu0 }
 0x508   : > { %v2388_v46 = vadd.f32 %v3678_v57, %v2384_v42 }
 0x509   : > { %v2367_v53 = vpop.f32.mrf.mxu0 }
 0x50a   : > { %v2386_v38 = vadd.f32 %v2382_v44, %v2367_v53  ;;  %v2396_v61 = vmul.f32 0.01, %v2388_v46  ;;  %vm2392_vm3 = vcmp.gt.f32.partialorder %v2388_v46, 0.0 }
 0x50b   : > { %v3679_v60 = vpop.f32.mrf.mxu0 }
 0x50c   : > { %v2394_v50 = vmul.f32 0.01, %v2386_v38  ;;  %v2389_v0 = vadd.f32 %v3679_v60, %v2385_v48  ;;  %vm2390_vm4 = vcmp.gt.f32.partialorder %v2386_v38, 0.0  ;;  %v2400_v7 = vsel %vm2392_vm3, %v2388_v46, %v2396_v61 }
 0x50d   : > { %v2370_v1 = vpop.f32.mrf.mxu0  ;;  %v2404_v13 = vmul.f32 0.0, %v2400_v7 }
 0x50e   : > { %vm2393_vm5 = vcmp.gt.f32.partialorder %v2389_v0, 0.0  ;;  %v2397_v2 = vmul.f32 0.01, %v2389_v0  ;;  %v2387_v54 = vadd.f32 %v2383_v62, %v2370_v1  ;;  %v2398_v45 = vsel %vm2390_vm4, %v2386_v38, %v2394_v50 }
 0x50f   : > { %v2406_v56 = vmul.f32 0.0, %v2398_v45 }
 0x510   : > { %vm2391_vm6 = vcmp.gt.f32.partialorder %v2387_v54, 0.0  ;;  %v2395_v8 = vmul.f32 0.01, %v2387_v54  ;;  %v2401_v9 = vsel %vm2393_vm5, %v2389_v0, %v2397_v2  ;;  %v3960_v2 = vld [vmem:[%s4776_s13 + $0x8] sm:$0xff]  }
 0x511   : > { %v3896_v5 = vpack.i.bf16 %v2401_v9, %v2400_v7  ;;  %v2405_v49 = vmul.f32 0.0, %v2401_v9  ;;  %v3962_v7 = vld [vmem:[%s4776_s13 + $0x18] sm:$0xff]  }
 0x512   : > { %v2399_v10 = vsel %vm2391_vm6, %v2387_v54, %v2395_v8  ;;  %v3961_v54 = vld [vmem:[%s4776_s13 + $0x10] sm:$0xff]   ;;  %v2218_v8 = vld [vmem:[#allocation2] sm:$0xff] }
 0x513   : > { %3897 = vrot.lane.b32.xlu1 %v3896_v5, %s3983_s28  ;;  %v2407_v11 = vmul.f32 0.0, %v2399_v10  ;;  %v2219_v5 = vld [vmem:[#allocation2 + $0x58] sm:$0xff] }
 0x515   : > { %v3891_v47 = vpack.i.bf16 %v2407_v11, %v2406_v56  ;;  %v2221_v11 = vld [vmem:[#allocation2 + $0x50] sm:$0xff] }
 0x517   : > { %2474 = vrot.lane.b32.xlu1 %v3679_v60, %s3985_s3  ;;  %3892 = vrot.lane.b32.xlu0 %v3891_v47, %s3983_s28  ;;  %v2222_v47 = vld [vmem:[#allocation2 + $0x20] sm:$0xff] }
 0x51b   : > { %2470 = vrot.lane.b32.xlu1 %v2370_v1, %s3985_s3  ;;  %2472 = vrot.lane.b32.xlu0 %v3678_v57, %s3985_s3 }
 0x51f   : > { %2468 = vrot.lane.b32.xlu0 %v2367_v53, %s3985_s3 }
 0x585   : > { %v3898_v12 = vpop.permute.xlu1 %3897 }
 0x586   : > { %v3900_v14 = vunpack.i.h.bf16 %v3898_v12  ;;  %v3899_v16 = vunpack.i.l.bf16 %v3898_v12  ;;  %v3931_v12 = vpack.i.bf16 %v2222_v47, %v2221_v11 }
 0x588   : > { %v2428_v3 = vsel %vm2287_vm1, %v2404_v13, %v3899_v16  ;;  %v2429_v17 = vsel %vm2287_vm1, %v2405_v49, %v3900_v14  ;;  %v2223_v13 = vld [vmem:[#allocation2 + $0x8] sm:$0xff]  ;;  %v2224_v49 = vld [vmem:[#allocation2 + $0x38] sm:$0xff] }
 0x589   : > { %v2431_v18 = vpack.c.bf16 %v2429_v17, %v2428_v3  ;;  %v3893_v19 = vpop.permute.xlu0 %3892  ;;  %v2475_v23 = vpop.permute.xlu1 %2474  ;;  %v3936_v14 = vpack.i.bf16 %v2224_v49, %v2223_v13  ;;  %v3963_v16 = vld [vmem:[%s4777_s14 + $0x28] sm:$0xff]   ;;  %v3964_v3 = vld [vmem:[%s4777_s14 + $0x20] sm:$0xff]   ;;  %v3965_v17 = vld [vmem:[%s4777_s14 + $0x18] sm:$0xff]  }
 0x58a   : > { %v3895_v59 = vunpack.i.h.bf16 %v3893_v19  ;;  %v3894_v20 = vunpack.i.l.bf16 %v3893_v19  ;;  %3704 = vmatprep.subr.bf16.mxu1 %v3963_v16  ;;  %v3967_v19 = vld [vmem:[%s4777_s14 + $0x8] sm:$0xff]  }
 0x58c   : > { %v2426_v21 = vsel %vm2287_vm1, %v2398_v45, %v3894_v20  ;;  %v2427_v31 = vsel %vm2287_vm1, %v2399_v10, %v3895_v59  ;;  %v2217_v45 = vld [vmem:[#allocation2 + $0x30] sm:$0xff]  ;;  %v2220_v10 = vld [vmem:[#allocation2 + $0x18] sm:$0xff]  ;;  %v3968_v59 = vld [vmem:[%s4777_s14] sm:$0xff]  }
 0x58d   : > { %v2430_v22 = vpack.c.bf16 %v2427_v31, %v2426_v21  ;;  %v2473_v4 = vpop.permute.xlu0 %2472  ;;  %v2471_v32 = vpop.permute.xlu1 %2470  ;;  %v3911_v9 = vpack.i.bf16 %v2218_v8, %v2217_v45  ;;  %v3916_v56 = vpack.i.bf16 %v2220_v10, %v2219_v5  ;;  %v3970_v5 = vld [vmem:[%s4779_s16] sm:$0xff]  }
 0x58f   : > { %3688 = vmatprep.mubr.msk.bf16.mxu1 %vm2326_vm2, %v2430_v22 }
 0x590   : > { %3689 = vmatmul.mubr.msk.bf16.vlgmr.msra.gmra.mxu1 %vm2326_vm2, %v2431_v18  ;;  %v3966_v18 = vld [vmem:[%s4777_s14 + $0x10] sm:$0xff]  }
 0x591   : > { %v2469_v24 = vpop.permute.xlu0 %2468  ;;  %3705 = vmatpush3.bf16.msra.mxu1 %v3963_v16 }
 0x592   : > { %3706 = vmatprep.subr.bf16.mxu1 %v3964_v3 }
 0x595   : > { %3707 = vmatpush3.bf16.msra.mxu1 %v3964_v3 }
 0x596   : > { %3708 = vmatprep.subr.bf16.mxu1 %v3965_v17 }
 0x599   : > { %3709 = vmatpush3.bf16.msra.mxu1 %v3965_v17 }
 0x59a   : > { %3710 = vmatprep.subr.bf16.mxu1 %v3966_v18 }
 0x59d   : > { %3711 = vmatpush3.bf16.msra.mxu1 %v3966_v18 }
 0x59e   : > { %3712 = vmatprep.subr.bf16.mxu1 %v3967_v19 }
 0x5a1   : > { %3713 = vmatpush3.bf16.msra.mxu1 %v3967_v19 }
 0x5a2   : > { %3714 = vmatprep.subr.bf16.mxu1 %v3968_v59 }
 0x5a5   : > { %3715 = vmatpush3.bf16.msra.mxu1 %v3968_v59 }
 0x650   : > { %v3690_v6 = vpop.f32.mrf.mxu1 }
 0x651   : > { %v2529_v25 = vadd.f32 %v3690_v6, %v2473_v4 }
 0x652   : > { %v2520_v52 = vpop.f32.mrf.mxu1 }
 0x653   : > { %v2521_v27 = vadd.f32 %v2520_v52, %v2469_v24  ;;  %v2541_v58 = vadd.f32 %v2537_v28, %v2529_v25  ;;  %v3969_v25 = vld [vmem:[%s4779_s16 + $0x8] sm:$0xff]  }
 0x654   : > { %v3691_v55 = vpop.f32.mrf.mxu1 }
 0x655   : > { %v2532_v30 = vadd.f32 %v3691_v55, %v2475_v23  ;;  %v2539_v63 = vadd.f32 %v2535_v29, %v2521_v27  ;;  %v2553_v57 = vmul.f32 0.0, %v2541_v58 }
 0x656   : > { %v2523_v33 = vpop.f32.mrf.mxu1 }
 0x657   : > { %v2542_v35 = vadd.f32 %v2538_v15, %v2532_v30  ;;  %v2524_v36 = vadd.f32 %v2523_v33, %v2471_v32  ;;  %v2555_v40 = vmul.f32 0.0, %v2539_v63 }
 0x659   : > { %v2540_v26 = vadd.f32 %v2536_v34, %v2524_v36  ;;  %v3901_v39 = vpack.i.bf16 %v2542_v35, %v2541_v58  ;;  %v2554_v44 = vmul.f32 0.0, %v2542_v35 }
 0x65b   : > { %v2556_v41 = vmul.f32 0.0, %v2540_v26  ;;  %3902 = vrot.lane.b32.xlu0 %v3901_v39, %s3983_s28 }
 0x65d   : > { %v3906_v42 = vpack.i.bf16 %v2556_v41, %v2555_v40 }
 0x65f   : > { %3907 = vrot.lane.b32.xlu1 %v3906_v42, %s3983_s28  ;;  %3912 = vrot.lane.b32.xlu0 %v3911_v9, %s3983_s28 }
 0x663   : > { %3917 = vrot.lane.b32.xlu0 %v3916_v56, %s3983_s28  ;;  %v3410_v56 = vld [vmem:[%s4778_s15] ss:$0 sm:$0xff] }
 0x667   : > { %3932 = vrot.lane.b32.xlu0 %v3931_v12, %s3983_s28 }
 0x66b   : > { %3937 = vrot.lane.b32.xlu0 %v3936_v14, %s3983_s28 }
 0x6cd   : > { %v3903_v43 = vpop.permute.xlu0 %3902 }
 0x6ce   : > { %v3905_v46 = vunpack.i.h.bf16 %v3903_v43  ;;  %v3904_v53 = vunpack.i.l.bf16 %v3903_v43 }
 0x6d0   : > { %v2577_v48 = vsel %vm2287_vm1, %v2553_v57, %v3904_v53  ;;  %v2578_v38 = vsel %vm2287_vm1, %v2554_v44, %v3905_v46 }
 0x6d1   : > { %v3908_v51 = vpop.permute.xlu1 %3907  ;;  %v2580_v61 = vpack.c.bf16 %v2578_v38, %v2577_v48  ;;  %v3913_v55 = vpop.permute.xlu0 %3912 }
 0x6d2   : > { %v3910_v60 = vunpack.i.h.bf16 %v3908_v51  ;;  %v3909_v62 = vunpack.i.l.bf16 %v3908_v51  ;;  %v3915_v30 = vunpack.i.h.bf16 %v3913_v55  ;;  %v3914_v32 = vunpack.i.l.bf16 %v3913_v55 }
 0x6d3   : > { %3692 = vmatprep.subr.bf16.mxu0 %v2580_v61 }
 0x6d4   : > { %3693 = vmatpush3.bf16.msra.mxu0 %v2580_v61  ;;  %v2575_v50 = vsel %vm2287_vm1, %v2539_v63, %v3909_v62  ;;  %v2576_v0 = vsel %vm2287_vm1, %v2540_v26, %v3910_v60 }
 0x6d5   : > { %v2579_v1 = vpack.c.bf16 %v2576_v0, %v2575_v50  ;;  %v3918_v15 = vpop.permute.xlu0 %3917 }
 0x6d6   : > { %v3920_v35 = vunpack.i.h.bf16 %v3918_v15  ;;  %v3919_v36 = vunpack.i.l.bf16 %v3918_v15 }
 0x6d7   : > { %3694 = vmatprep.subr.bf16.mxu0 %v2579_v1 }
 0x6d8   : > { %3695 = vmatpush3.bf16.msra.mxu0 %v2579_v1 }
 0x6d9   : > { %3724 = vmatprep.subr.bf16.mxu0 %v3969_v25  ;;  %v3933_v63 = vpop.permute.xlu0 %3932 }
 0x6da   : > { %v3935_v44 = vunpack.i.h.bf16 %v3933_v63  ;;  %v3934_v46 = vunpack.i.l.bf16 %v3933_v63 }
 0x6db   : > { %3697 = vmatmul.mubr.msk.bf16.vlgmr.msra.gmra.mxu0 %vm2287_vm1, %v3960_v2 }
 0x6dc   : > { %3700 = vmatprep.mubr.msk.bf16.mxu0 %vm2287_vm1, %v3961_v54  ;;  %3725 = vmatpush3.bf16.msra.mxu0 %v3969_v25 }
 0x6dd   : > { %v3938_v38 = vpop.permute.xlu0 %3937  ;;  %3726 = vmatprep.subr.bf16.mxu0 %v3970_v5 }
 0x6de   : > { %v3940_v60 = vunpack.i.h.bf16 %v3938_v38  ;;  %v3939_v62 = vunpack.i.l.bf16 %v3938_v38  ;;  %v3065_v38 = vld [vmem:[%s4781_s18 + $0x18] sm:$0xff] }
 0x6e0   : > { %3727 = vmatpush3.bf16.msra.mxu0 %v3970_v5 }
 0x6e3   : > { %3701 = vmatmul.mubr.msk.bf16.gmra.mxu0 %vm2287_vm1, %v3962_v7 }
 0x79b   : > { %v3698_v20 = vpop.f32.mrf.mxu0 }
 0x79d   : > { %v2647_v21 = vpop.f32.mrf.mxu0 }
 0x79f   : > { %v3699_v31 = vpop.f32.mrf.mxu0 }
 0x7a0   : > { %v3926_v24 = vpack.i.bf16 %v3699_v31, %v3698_v20 }
 0x7a1   : > { %v2650_v22 = vpop.f32.mrf.mxu0 }
 0x7a2   : > { %v3921_v4 = vpack.i.bf16 %v2650_v22, %v2647_v21 }
 0x7a3   : > { %v3702_v23 = vpop.f32.mrf.mxu0 }
 0x7a4   : > { %3922 = vrot.lane.b32.xlu1 %v3921_v4, %s3983_s28 }
 0x7a5   : > { %v2663_v6 = vpop.f32.mrf.mxu0 }
 0x7a7   : > { %v3703_v52 = vpop.f32.mrf.mxu0 }
 0x7a8   : > { %3927 = vrot.lane.b32.xlu1 %v3926_v24, %s3983_s28  ;;  %v3946_v29 = vpack.i.bf16 %v3703_v52, %v3702_v23 }
 0x7a9   : > { %v2666_v27 = vpop.f32.mrf.mxu0 }
 0x7aa   : > { %v3941_v28 = vpack.i.bf16 %v2666_v27, %v2663_v6 }
 0x7ac   : > { %3942 = vrot.lane.b32.xlu1 %v3941_v28, %s3983_s28 }
 0x7b0   : > { %3947 = vrot.lane.b32.xlu1 %v3946_v29, %s3983_s28 }
 0x816   : > { %v3923_v33 = vpop.permute.xlu1 %3922 }
 0x817   : > { %v3925_v34 = vunpack.i.h.bf16 %v3923_v33  ;;  %v3924_v58 = vunpack.i.l.bf16 %v3923_v33 }
 0x819   : > { %v2742_v37 = vsel %vm2287_vm1, %v3914_v32, %v3924_v58  ;;  %v2743_v26 = vsel %vm2287_vm1, %v3915_v30, %v3925_v34 }
 0x81a   : > { %v3928_v39 = vpop.permute.xlu1 %3927  ;;  %v2750_v40 = vpack.c.bf16 %v2743_v26, %v2742_v37 }
 0x81b   : > { %v3930_v41 = vunpack.i.h.bf16 %v3928_v39  ;;  %v3929_v42 = vunpack.i.l.bf16 %v3928_v39 }
 0x81c   : > { %3716 = vmatprep.mubr.msk.bf16.mxu1 %vm1455_vm15, %v2750_v40  ;;  %v3064_v40 = vld [vmem:[%s4781_s18 + $0x10] sm:$0xff] }
 0x81d   : > { %v2745_v43 = vsel %vm2287_vm1, %v3920_v35, %v3930_v41  ;;  %v2744_v57 = vsel %vm2287_vm1, %v3919_v36, %v3929_v42  ;;  %v3417_v42 = vld [vmem:[%s4801_s6] ss:$0 sm:$0xff] }
 0x81e   : > { %v2751_v53 = vpack.c.bf16 %v2745_v43, %v2744_v57  ;;  %v3943_v48 = vpop.permute.xlu1 %3942  ;;  %v3062_v43 = vld [vmem:[%s4781_s18] sm:$0xff] }
 0x81f   : > { %v3945_v51 = vunpack.i.h.bf16 %v3943_v48  ;;  %v3944_v61 = vunpack.i.l.bf16 %v3943_v48 }
 0x820   : > { %3717 = vmatmul.mubr.msk.bf16.vlgmr.msra.gmra.mxu1 %vm1455_vm15, %v2751_v53 }
 0x821   : > { %v2746_v50 = vsel %vm2287_vm1, %v3934_v46, %v3944_v61  ;;  %v2747_v0 = vsel %vm2287_vm1, %v3935_v44, %v3945_v51  ;;  %v3072_v46 = vmul.f32 0.3, %v3064_v40 }
 0x822   : > { %v3948_v1 = vpop.permute.xlu1 %3947  ;;  %v2752_v2 = vpack.c.bf16 %v2747_v0, %v2746_v50  ;;  %v3063_v50 = vld [vmem:[%s4781_s18 + $0x8] sm:$0xff] }
 0x823   : > { %v3950_v54 = vunpack.i.h.bf16 %v3948_v1  ;;  %v3949_v7 = vunpack.i.l.bf16 %v3948_v1 }
 0x824   : > { %3720 = vmatprep.mubr.msk.bf16.mxu1 %vm1455_vm15, %v2752_v2 }
 0x825   : > { %v2748_v45 = vsel %vm2287_vm1, %v3939_v62, %v3949_v7  ;;  %v2749_v8 = vsel %vm2287_vm1, %v3940_v60, %v3950_v54  ;;  %v3070_v60 = vmul.f32 0.3, %v3062_v43  ;;  %v3073_v54 = vmul.f32 0.3, %v3065_v38 }
 0x826   : > { %v2753_v9 = vpack.c.bf16 %v2749_v8, %v2748_v45  ;;  %v3068_v8 = vld [vmem:[%s4781_s18 + $0x30] sm:$0xff] }
 0x828   : > { %3721 = vmatmul.mubr.msk.bf16.gmra.mxu1 %vm1455_vm15, %v2753_v9  ;;  %vm3086_vm15 = vcmask 64512  }
 0x8e0   : > { %v3718_v10 = vpop.f32.mrf.mxu1 }
 0x8e1   : > { %2950 = vrot.lane.b32.xlu0 %v3718_v10, %s3985_s3  ;;  %v2888_v12 = vadd.f32 %v3718_v10, %v3410_v56 }
 0x8e2   : > { %v2848_v11 = vpop.f32.mrf.mxu1 }
 0x8e3   : > { %v2886_v47 = vadd.f32 %v3410_v56, %v2848_v11  ;;  %v2904_v18 = vmul.f32 0.01, %v2888_v12  ;;  %vm2896_vm9 = vcmp.gt.f32.partialorder %v2888_v12, 0.0 }
 0x8e4   : > { %v3719_v13 = vpop.f32.mrf.mxu1 }
 0x8e5   : > { %v2889_v49 = vadd.f32 %v3719_v13, %v3410_v56  ;;  %2946 = vrot.lane.b32.xlu0 %v2848_v11, %s3985_s3  ;;  %2952 = vrot.lane.b32.xlu1 %v3719_v13, %s3985_s3  ;;  %v2902_v16 = vmul.f32 0.01, %v2886_v47  ;;  %vm2894_vm8 = vcmp.gt.f32.partialorder %v2886_v47, 0.0  ;;  %v2912_v23 = vsel %vm2896_vm9, %v2888_v12, %v2904_v18  ;;  %v3066_v12 = vld [vmem:[%s4781_s18 + $0x20] sm:$0xff] }
 0x8e6   : > { %v2851_v14 = vpop.f32.mrf.mxu1 }
 0x8e7   : > { %vm2897_vm7 = vcmp.gt.f32.partialorder %v2889_v49, 0.0  ;;  %v2905_v3 = vmul.f32 0.01, %v2889_v49  ;;  %v2887_v17 = vadd.f32 %v3410_v56, %v2851_v14  ;;  %v2910_v31 = vsel %vm2894_vm8, %v2886_v47, %v2902_v16 }
 0x8e8   : > { %v3722_v19 = vpop.f32.mrf.mxu1  ;;  %v3076_v16 = vmul.f32 0.3, %v3068_v8 }
 0x8e9   : > { %vm2895_vm10 = vcmp.gt.f32.partialorder %v2887_v17, 0.0  ;;  %v2903_v59 = vmul.f32 0.01, %v2887_v17  ;;  %2948 = vrot.lane.b32.xlu1 %v2851_v14, %s3985_s3  ;;  %v2913_v20 = vsel %vm2897_vm7, %v2889_v49, %v2905_v3  ;;  %v2892_v24 = vadd.f32 %v3722_v19, %v3410_v56 }
 0x8ea   : > { %v2864_v21 = vpop.f32.mrf.mxu1  ;;  %v2919_v25 = vpack.c.bf16 %v2913_v20, %v2912_v23  ;;  %v3074_v20 = vmul.f32 0.3, %v3066_v12 }
 0x8eb   : > { %v2911_v22 = vsel %vm2895_vm10, %v2887_v17, %v2903_v59  ;;  %v2890_v4 = vadd.f32 %v3410_v56, %v2864_v21  ;;  %2954 = vrot.lane.b32.xlu0 %v2864_v21, %s3985_s3  ;;  %v2908_v30 = vmul.f32 0.01, %v2892_v24  ;;  %vm2900_vm13 = vcmp.gt.f32.partialorder %v2892_v24, 0.0  ;;  %v3069_v17 = vld [vmem:[%s4781_s18 + $0x38] sm:$0xff] }
 0x8ec   : > { %v2918_v6 = vpack.c.bf16 %v2911_v22, %v2910_v31  ;;  %v3723_v52 = vpop.f32.mrf.mxu1  ;;  %v3067_v22 = vld [vmem:[%s4781_s18 + $0x28] sm:$0xff] }
 0x8ed   : > { %v2893_v27 = vadd.f32 %v3723_v52, %v3410_v56  ;;  %v2906_v29 = vmul.f32 0.01, %v2890_v4  ;;  %vm2898_vm12 = vcmp.gt.f32.partialorder %v2890_v4, 0.0  ;;  %v2916_v63 = vsel %vm2900_vm13, %v2892_v24, %v2908_v30 }
 0x8ee   : > { %v2867_v28 = vpop.f32.mrf.mxu1  ;;  %3728 = vmatprep.mubr.msk.bf16.mxu0 %vm2287_vm1, %v2918_v6  ;;  %v3077_v24 = vmul.f32 0.3, %v3069_v17 }
 0x8ef   : > { %vm2901_vm11 = vcmp.gt.f32.partialorder %v2893_v27, 0.0  ;;  %v2909_v55 = vmul.f32 0.01, %v2893_v27  ;;  %v2891_v15 = vadd.f32 %v3410_v56, %v2867_v28  ;;  %3729 = vmatmul.mubr.msk.bf16.vlgmr.msra.gmra.mxu0 %vm2287_vm1, %v2919_v25  ;;  %2958 = vrot.lane.b32.xlu0 %v3722_v19, %s3985_s3  ;;  %v2914_v34 = vsel %vm2898_vm12, %v2890_v4, %v2906_v29 }
 0x8f0   : > { %2956 = vrot.lane.b32.xlu1 %v2867_v28, %s3985_s3  ;;  %v3071_v56 = vmul.f32 0.3, %v3063_v50  ;;  %v3075_v29 = vmul.f32 0.3, %v3067_v22 }
 0x8f1   : > { %vm2899_vm14 = vcmp.gt.f32.partialorder %v2891_v15, 0.0  ;;  %v2907_v32 = vmul.f32 0.01, %v2891_v15  ;;  %v2917_v33 = vsel %vm2901_vm11, %v2893_v27, %v2909_v55 }
 0x8f2   : > { %v2921_v36 = vpack.c.bf16 %v2917_v33, %v2916_v63 }
 0x8f3   : > { %v2915_v58 = vsel %vm2899_vm14, %v2891_v15, %v2907_v32 }
 0x8f4   : > { %v2920_v35 = vpack.c.bf16 %v2915_v58, %v2914_v34  ;;  %2960 = vrot.lane.b32.xlu1 %v3723_v52, %s3985_s3 }
 0x8f6   : > { %3732 = vmatprep.mubr.msk.bf16.mxu0 %vm2287_vm1, %v2920_v35 }
 0x8f7   : > { %3733 = vmatmul.mubr.msk.bf16.gmra.mxu0 %vm2287_vm1, %v2921_v36 }
 0x953   : > { %v2951_v37 = vpop.permute.xlu0 %2950 }
 0x957   : > { %v2953_v26 = vpop.permute.xlu1 %2952  ;;  %v2947_v39 = vpop.permute.xlu0 %2946 }
 0x95b   : > { %v2949_v57 = vpop.permute.xlu1 %2948 }
 0x95d   : > { %v2955_v53 = vpop.permute.xlu0 %2954 }
 0x961   : > { %v2959_v11 = vpop.permute.xlu0 %2958 }
 0x962   : > { %v2957_v7 = vpop.permute.xlu1 %2956 }
 0x966   : > { %v2961_v21 = vpop.permute.xlu1 %2960 }
 0x9af   : > { %v3730_v41 = vpop.f32.mrf.mxu0 }
 0x9b0   : > { %v3025_v44 = vadd.f32 %v3730_v41, %v2951_v37 }
 0x9b1   : > { %v3016_v48 = vpop.f32.mrf.mxu0 }
 0x9b2   : > { %v3056_v51 = vadd.f32 %v3417_v42, %v3025_v44  ;;  %v3017_v61 = vadd.f32 %v3016_v48, %v2947_v39 }
 0x9b3   : > { %v3731_v62 = vpop.f32.mrf.mxu0 }
 0x9b4   : > { %v3080_v0 = vadd.f32 %v3072_v46, %v3056_v51  ;;  %v3054_v1 = vadd.f32 %v3417_v42, %v3017_v61  ;;  %v3028_v2 = vadd.f32 %v3731_v62, %v2953_v26 }
 0x9b5   : > { %v3019_v45 = vpop.f32.mrf.mxu0 }
 0x9b6   : > { %3089 = vst.msk [vmem:[%s4782_s19 + $0x10] sm:$0xff] %vm3086_vm15, %v3080_v0  ;;  %v3078_v9 = vadd.f32 %v3070_v60, %v3054_v1  ;;  %v3057_v5 = vadd.f32 %v3417_v42, %v3028_v2  ;;  %v3020_v10 = vadd.f32 %v3019_v45, %v2949_v57 }
 0x9b7   : > { %v3734_v47 = vpop.f32.mrf.mxu0 }
 0x9b8   : > { %3087 = vst.msk [vmem:[%s4782_s19] sm:$0xff] %vm3086_vm15, %v3078_v9  ;;  %v3081_v13 = vadd.f32 %v3073_v54, %v3057_v5  ;;  %v3055_v49 = vadd.f32 %v3417_v42, %v3020_v10  ;;  %v3041_v14 = vadd.f32 %v3734_v47, %v2959_v11 }
 0x9b9   : > { %v3032_v3 = vpop.f32.mrf.mxu0 }
 0x9ba   : > { %3090 = vst.msk [vmem:[%s4782_s19 + $0x18] sm:$0xff] %vm3086_vm15, %v3081_v13  ;;  %v3079_v18 = vadd.f32 %v3071_v56, %v3055_v49  ;;  %v3060_v19 = vadd.f32 %v3417_v42, %v3041_v14  ;;  %v3033_v59 = vadd.f32 %v3032_v3, %v2955_v53 }
 0x9bb   : > { %v3735_v31 = vpop.f32.mrf.mxu0 }
 0x9bc   : > { %3088 = vst.msk [vmem:[%s4782_s19 + $0x8] sm:$0xff] %vm3086_vm15, %v3079_v18  ;;  %v3084_v4 = vadd.f32 %v3076_v16, %v3060_v19  ;;  %v3058_v23 = vadd.f32 %v3417_v42, %v3033_v59  ;;  %v3044_v6 = vadd.f32 %v3735_v31, %v2961_v21 }
 0x9bd   : > { %v3035_v52 = vpop.f32.mrf.mxu0 }
 0x9be   : > { %3093 = vst.msk [vmem:[%s4782_s19 + $0x30] sm:$0xff] %vm3086_vm15, %v3084_v4  ;;  %v3082_v25 = vadd.f32 %v3074_v20, %v3058_v23  ;;  %v3061_v27 = vadd.f32 %v3417_v42, %v3044_v6  ;;  %v3036_v28 = vadd.f32 %v3035_v52, %v2957_v7 }
 0x9c0   : > { %3091 = vst.msk [vmem:[%s4782_s19 + $0x20] sm:$0xff] %vm3086_vm15, %v3082_v25  ;;  %v3085_v55 = vadd.f32 %v3077_v24, %v3061_v27  ;;  %v3059_v15 = vadd.f32 %v3417_v42, %v3036_v28 }
 0x9c2   : > { %3094 = vst.msk [vmem:[%s4782_s19 + $0x38] sm:$0xff] %vm3086_vm15, %v3085_v55  ;;  %v3083_v30 = vadd.f32 %v3075_v29, %v3059_v15 }
 0x9c4   : > { %3092 = vst.msk [vmem:[%s4782_s19 + $0x28] sm:$0xff] %vm3086_vm15, %v3083_v30 }
 0x9c5 PF: > { %s4802_s28 = sld [smem:[#allocation4_spill]] }
 0x9cb   : > { %s29_s0 = sadd.s32 1, %s4802_s28  }
 0x9cc   : > { %p26_p6 = scmp.ge.s32.totalorder %s29_s0, 4  }
 0x9ce   :  { %28 = sbr.rel (!%p26_p6) target bundleno = 7 (0x7), region = 150 }

</bundles_post_ra>
